<compile_context>
chip_gen: v7x
topology: tpu7x:2x2x1
jax: 0.10.0
libtpu: 0.0.40
codegen_flags: <defaults>
</compile_context>

<pallas_src>
import math

import jax
import jax.numpy as jnp
import numpy as np
from jax import lax
from jax.experimental import pallas as pl
from jax.experimental.pallas import tpu as pltpu


# ----------------------------- kernel-side math -----------------------------

_SQRT_HALF = 0.7071067811865476


def _gelu_exact(x):
    # PyTorch F.gelu default = exact erf-based GELU.
    return 0.5 * x * (1.0 + lax.erf(x * jnp.float32(_SQRT_HALF)))


def _layernorm(x, gamma, beta, eps=1e-5):
    mu = jnp.mean(x, axis=-1, keepdims=True)
    xc = x - mu
    var = jnp.mean(xc * xc, axis=-1, keepdims=True)
    return xc * lax.rsqrt(var + eps) * gamma + beta


def ae_kernel(x_ref, w1e_ref, wlat_ref, w1d_ref, wrec_ref, pvec_ref,
              z_ref, y_ref):
    """One row-tile of the fused encoder->decoder forward.

    x_ref  : (t, F) token rows (streamed / double-buffered by Pallas)
    w*_ref : weights pre-transposed to [in, out] (resident in VMEM)
    pvec   : (6, L) rows = [b1e, gamma_e, beta_e, b1d, gamma_d, beta_d]
    z_ref  : (t//pz, pz*L) lane-dense packed latent tile (row-major packing)
    y_ref  : (t//py, py*F) lane-dense packed reconstruction tile
    """
    x = x_ref[...].astype(jnp.float32)
    pv = pvec_ref[...].astype(jnp.float32)
    b1e, ge, be = pv[0:1, :], pv[1:2, :], pv[2:3, :]
    b1d, gd, bd = pv[3:4, :], pv[4:5, :], pv[5:6, :]

    # ---- Encoder: gelu(fc1) -> LayerNorm -> lat (no bias) ----
    h = jnp.dot(x, w1e_ref[...], preferred_element_type=jnp.float32) + b1e
    h = _layernorm(_gelu_exact(h), ge, be)
    z = jnp.dot(h, wlat_ref[...], preferred_element_type=jnp.float32)
    # Row-major pack to a lane-dense slab (no-op when z_ref.shape == z.shape).
    z_ref[...] = z.reshape(z_ref.shape).astype(z_ref.dtype)

    # ---- Decoder: gelu(fc1) -> LayerNorm -> rec (no bias) ----
    d = jnp.dot(z, w1d_ref[...], preferred_element_type=jnp.float32) + b1d
    d = _layernorm(_gelu_exact(d), gd, bd)
    y = jnp.dot(d, wrec_ref[...], preferred_element_type=jnp.float32)
    y_ref[...] = y.reshape(y_ref.shape).astype(y_ref.dtype)


# ------------------------------- JAX wrapper --------------------------------

def _pack_factor(d):
    """Rows packed per lane-dense output row (so last dim becomes a 128 mult)."""
    if d % 128 == 0:
        return 1
    if 128 % d == 0:
        return 128 // d
    # TODO(synk): general lane packing when d does not divide 128.
    return 1


def _build_call(Np, F, L, t, pz, py, single_buffer_weights):
    """Build the pallas_call for one (packing, buffering) configuration."""
    grid = (Np // t,)

    def _wspec(shape):
        # Constant index_map -> block never changes; single-buffer if allowed.
        if single_buffer_weights:
            return pl.BlockSpec(shape, lambda i: (0, 0),
                                pipeline_mode=pl.Buffered(1))
        return pl.BlockSpec(shape, lambda i: (0, 0))

    in_specs = [
        pl.BlockSpec((t, F), lambda i: (i, 0)),      # x tile (streamed)
        _wspec((F, L)),                              # w1e   (resident)
        _wspec((L, L)),                              # wlat  (resident)
        _wspec((L, L)),                              # w1d   (resident)
        _wspec((L, F)),                              # wrec  (resident)
        _wspec((6, L)),                              # packed bias/LN params
    ]
    out_specs = [
        pl.BlockSpec((t // pz, pz * L), lambda i: (i, 0)),   # packed z tile
        pl.BlockSpec((t // py, py * F), lambda i: (i, 0)),   # packed y tile
    ]
    out_shape = (
        jax.ShapeDtypeStruct((Np // pz, pz * L), jnp.float32),
        jax.ShapeDtypeStruct((Np // py, py * F), jnp.float32),
    )

    # VMEM plan: 2x-buffered streamed x/z/y tiles + (single- or double-
    # buffered) resident weights, plus ~30% + 4 MiB headroom for compiler
    # scratch.  Floor at 16 MiB, cap at v7x's 64 MiB physical.
    f32 = 4
    wbuf = 1 if single_buffer_weights else 2
    resident = wbuf * (F * L + 2 * L * L + L * F + 8 * L) * f32
    streamed = 2 * (t * F + t * L + t * F) * f32
    vmem_limit = int(1.3 * (resident + streamed)) + (4 << 20)
    vmem_limit = max(vmem_limit, 16 << 20)
    vmem_limit = min(vmem_limit, 64 << 20)

    flops = 2 * Np * (2 * F * L + 2 * L * L)
    transcendentals = Np * 2 * L                      # erf in the two GELUs
    bytes_accessed = f32 * (Np * (2 * F + L)
                            + F * L + 2 * L * L + L * F + 6 * L)

    return pl.pallas_call(
        ae_kernel,
        out_shape=out_shape,
        grid_spec=pltpu.PrefetchScalarGridSpec(
            num_scalar_prefetch=0,
            grid=grid,
            in_specs=in_specs,
            out_specs=out_specs,
        ),
        compiler_params=pltpu.CompilerParams(
            dimension_semantics=("parallel",),        # megacore sharding hint
            vmem_limit_bytes=vmem_limit,
        ),
        cost_estimate=pl.CostEstimate(
            flops=flops,
            transcendentals=transcendentals,
            bytes_accessed=bytes_accessed,
        ),
    )


def autoencoder_forward(x2d, params, *, tile_rows=4096):
    """x2d: [N, F] float32.  Returns (latent [N, L], reconstruction [N, F])."""
    N, F = x2d.shape
    L = params["w1e"].shape[1]

    # Lane packing factors for the two outputs and the row-tile alignment that
    # keeps every packed block (8, 128)-legal: t must be a multiple of
    # 8 * lcm(pz, py)  (=> t//pz and t//py are multiples of 8).
    pz0 = _pack_factor(L)
    py0 = _pack_factor(F)
    align = 8 * (pz0 * py0 // math.gcd(pz0, py0))

    t_req = max(align, (int(tile_rows) // align) * align)
    n_align = ((N + align - 1) // align) * align
    t = min(t_req, n_align)                 # don't over-pad tiny problems
    Np = ((N + t - 1) // t) * t
    if Np != N:
        # Zero rows just flow through bias/LN and are sliced off afterwards.
        x2d = jnp.pad(x2d, ((0, Np - N), (0, 0)))

    # Pack the six tiny [1, L] vectors into one resident (6, L) array.
    pvec = jnp.concatenate(
        [params["b1e"], params["ge"], params["be"],
         params["b1d"], params["gd"], params["bd"]], axis=0)

    args = (x2d, params["w1e"], params["wlat"], params["w1d"],
            params["wrec"], pvec)

    # Preferred config first (lane-dense packed stores + single-buffered
    # weights); fall back gracefully if the installed Mosaic rejects either.
    attempts = []
    packed_options = (True, False) if (pz0 > 1 or py0 > 1) else (False,)
    for packed in packed_options:
        for single_buf in (True, False):
            attempts.append((pz0 if packed else 1,
                             py0 if packed else 1,
                             single_buf))

    z_p = y_p = None
    last_err = None
    for pz, py, single_buf in attempts:
        try:
            z_p, y_p = _build_call(Np, F, L, t, pz, py, single_buf)(*args)
            break
        except Exception as e:  # lowering / compile fallback
            last_err = e
    if z_p is None:
        raise last_err

    # Unpack: the in-kernel packing is a plain row-major reshape, so the
    # inverse is a free reshape (identity when packing was disabled).
    z = z_p.reshape(Np, L)[:N]
    y = y_p.reshape(Np, F)[:N]
    return z, y


# ------------------------- deterministic parameters -------------------------

def init_params(key, feature_size, latent_size):
    ks = jax.random.split(key, 8)
    f, l = feature_size, latent_size
    p = {
        # Encoder: fc1 (F->L) + bias, LayerNorm(L), lat (L->L, no bias)
        "w1e": 0.05 * jax.random.normal(ks[0], (f, l), jnp.float32),
        "b1e": 0.05 * jax.random.normal(ks[1], (1, l), jnp.float32),
        "ge": 1.0 + 0.1 * jax.random.normal(ks[2], (1, l), jnp.float32),
        "be": 0.1 * jax.random.normal(ks[3], (1, l), jnp.float32),
        "wlat": 0.05 * jax.random.normal(ks[4], (l, l), jnp.float32),
        # Decoder: fc1 (L->L) + bias, LayerNorm(L), rec (L->F, no bias)
        "w1d": 0.05 * jax.random.normal(ks[5], (l, l), jnp.float32),
        "b1d": 0.05 * jax.random.normal(ks[6], (1, l), jnp.float32),
        "gd": 1.0 + 0.1 * jax.random.normal(ks[7], (1, l), jnp.float32),
        "bd": 0.1 * jax.random.normal(ks[0], (1, l), jnp.float32),
        "wrec": 0.05 * jax.random.normal(ks[1], (l, f), jnp.float32),
    }
    return p


# ------------------------------ pure-JAX reference --------------------------

def reference_forward(x2d, p):
    def gelu(x):
        return jax.nn.gelu(x, approximate=False)

    def ln(x, g, b, eps=1e-5):
        mu = jnp.mean(x, axis=-1, keepdims=True)
        var = jnp.mean((x - mu) ** 2, axis=-1, keepdims=True)
        return (x - mu) / jnp.sqrt(var + eps) * g + b

    h = ln(gelu(x2d @ p["w1e"] + p["b1e"]), p["ge"], p["be"])
    z = h @ p["wlat"]
    d = ln(gelu(z @ p["w1d"] + p["b1d"]), p["gd"], p["bd"])
    y = d @ p["wrec"]
    return z, y


if __name__ == "__main__":
    feature_size, latent_size = 32, 16

    key = jax.random.PRNGKey(0)
    kx, kp, kx2 = jax.random.split(key, 3)
    params = init_params(kp, feature_size, latent_size)

    # --- Small, module-consistent shapes: batch=2, seq=8 ---
    batch, seq = 2, 8
    x = jax.random.normal(kx, (batch, seq, feature_size), jnp.float32)
    x2d = x.reshape(batch * seq, feature_size)   # Linear/LayerNorm act on last dim

    z, y = autoencoder_forward(x2d, params)
    z = jax.block_until_ready(z)
    y = jax.block_until_ready(y)

    z_ref, y_ref = reference_forward(x2d, params)
    np.testing.assert_allclose(np.asarray(z), np.asarray(z_ref), rtol=1e-5, atol=1e-5)
    np.testing.assert_allclose(np.asarray(y), np.asarray(y_ref), rtol=1e-5, atol=1e-5)

    # Reshape back to (batch, seq, ...) if the caller wants the original layout.
    _ = z.reshape(batch, seq, latent_size)
    _ = y.reshape(batch, seq, feature_size)

    # --- Larger check: exercises the multi-step pipelined grid, lane-dense
    #     packed stores across several tiles, and row padding (2100 -> 2304).
    x2 = jax.random.normal(kx2, (2100, feature_size), jnp.float32)
    z2, y2 = autoencoder_forward(x2, params, tile_rows=256)
    z2 = jax.block_until_ready(z2)
    y2 = jax.block_until_ready(y2)
    z2_ref, y2_ref = reference_forward(x2, params)
    np.testing.assert_allclose(np.asarray(z2), np.asarray(z2_ref), rtol=1e-5, atol=1e-5)
    np.testing.assert_allclose(np.asarray(y2), np.asarray(y2_ref), rtol=1e-5, atol=1e-5)

    print("KERNEL_OK")
</pallas_src>

<mosaic_0001>
module attributes {stable_mosaic.version = 11 : i64} {
  func.func @ae_kernel(%arg0: i32, %arg1: memref<64x32xf32, #tpu.memory_space<vmem>>, %arg2: memref<32x16xf32, #tpu.memory_space<vmem>>, %arg3: memref<16x16xf32, #tpu.memory_space<vmem>>, %arg4: memref<16x16xf32, #tpu.memory_space<vmem>>, %arg5: memref<16x32xf32, #tpu.memory_space<vmem>>, %arg6: memref<6x16xf32, #tpu.memory_space<vmem>>, %arg7: memref<8x128xf32, #tpu.memory_space<vmem>>, %arg8: memref<16x128xf32, #tpu.memory_space<vmem>>) attributes {dimension_semantics = [#tpu.dimension_semantics<parallel>], iteration_bounds = array<i64: 1>, scalar_prefetch = 0 : i64, scratch_operands = 0 : i64, tpu.core_type = #tpu.core_type<tc>, window_params = [{transform_indices = @transform_0, window_bounds = array<i64: 64, 32>}, {pipeline_mode = #tpu.pipeline_mode<synchronous>, transform_indices = @transform_1, window_bounds = array<i64: 32, 16>}, {pipeline_mode = #tpu.pipeline_mode<synchronous>, transform_indices = @transform_2, window_bounds = array<i64: 16, 16>}, {pipeline_mode = #tpu.pipeline_mode<synchronous>, transform_indices = @transform_3, window_bounds = array<i64: 16, 16>}, {pipeline_mode = #tpu.pipeline_mode<synchronous>, transform_indices = @transform_4, window_bounds = array<i64: 16, 32>}, {pipeline_mode = #tpu.pipeline_mode<synchronous>, transform_indices = @transform_5, window_bounds = array<i64: 6, 16>}, {transform_indices = @transform_6, window_bounds = array<i64: 8, 128>}, {transform_indices = @transform_7, window_bounds = array<i64: 16, 128>}]} {
    %c0 = arith.constant 0 : index
    %c0_0 = arith.constant 0 : index
    %0 = vector.load %arg1[%c0, %c0_0] : memref<64x32xf32, #tpu.memory_space<vmem>>, vector<64x32xf32>
    %c0_1 = arith.constant 0 : index
    %c0_2 = arith.constant 0 : index
    %1 = vector.load %arg6[%c0_1, %c0_2] : memref<6x16xf32, #tpu.memory_space<vmem>>, vector<6x16xf32>
    %2 = vector.extract_strided_slice %1 {offsets = [0, 0], sizes = [1, 16], strides = [1, 1]} : vector<6x16xf32> to vector<1x16xf32>
    %3 = vector.extract_strided_slice %1 {offsets = [1, 0], sizes = [1, 16], strides = [1, 1]} : vector<6x16xf32> to vector<1x16xf32>
    %4 = vector.extract_strided_slice %1 {offsets = [2, 0], sizes = [1, 16], strides = [1, 1]} : vector<6x16xf32> to vector<1x16xf32>
    %5 = vector.extract_strided_slice %1 {offsets = [3, 0], sizes = [1, 16], strides = [1, 1]} : vector<6x16xf32> to vector<1x16xf32>
    %6 = vector.extract_strided_slice %1 {offsets = [4, 0], sizes = [1, 16], strides = [1, 1]} : vector<6x16xf32> to vector<1x16xf32>
    %7 = vector.extract_strided_slice %1 {offsets = [5, 0], sizes = [1, 16], strides = [1, 1]} : vector<6x16xf32> to vector<1x16xf32>
    %c0_3 = arith.constant 0 : index
    %c0_4 = arith.constant 0 : index
    %8 = vector.load %arg2[%c0_3, %c0_4] : memref<32x16xf32, #tpu.memory_space<vmem>>, vector<32x16xf32>
    %cst = arith.constant dense<0.000000e+00> : vector<64x16xf32>
    %9 = tpu.matmul %0, %8, %cst {dimension_numbers = #tpu.dot_dimension_numbers<[1], [0], [0], [1], [0, 0, 1, 1], [], []>} : vector<64x32xf32>, vector<32x16xf32>, vector<64x16xf32> -> vector<64x16xf32>
    %10 = vector.broadcast %2 : vector<1x16xf32> to vector<64x16xf32>
    %11 = arith.addf %9, %10 : vector<64x16xf32>
    %cst_5 = arith.constant 5.000000e-01 : f32
    %12 = vector.broadcast %cst_5 : f32 to vector<64x16xf32>
    %13 = arith.mulf %12, %11 : vector<64x16xf32>
    %cst_6 = arith.constant 0.707106769 : f32
    %14 = vector.broadcast %cst_6 : f32 to vector<64x16xf32>
    %15 = arith.mulf %11, %14 : vector<64x16xf32>
    %16 = math.erf %15 : vector<64x16xf32>
    %cst_7 = arith.constant 1.000000e+00 : f32
    %17 = vector.broadcast %cst_7 : f32 to vector<64x16xf32>
    %18 = arith.addf %17, %16 : vector<64x16xf32>
    %19 = arith.mulf %13, %18 : vector<64x16xf32>
    %cst_8 = arith.constant dense<0.000000e+00> : vector<64xf32>
    %20 = vector.multi_reduction <add>, %19, %cst_8 [1] : vector<64x16xf32> to vector<64xf32>
    %21 = vector.shape_cast %20 : vector<64xf32> to vector<64x1xf32>
    %cst_9 = arith.constant 1.600000e+01 : f32
    %22 = vector.broadcast %cst_9 : f32 to vector<64x1xf32>
    %23 = arith.divf %21, %22 : vector<64x1xf32>
    %24 = vector.broadcast %23 : vector<64x1xf32> to vector<64x16xf32>
    %25 = arith.subf %19, %24 : vector<64x16xf32>
    %26 = arith.mulf %25, %25 : vector<64x16xf32>
    %cst_10 = arith.constant dense<0.000000e+00> : vector<64xf32>
    %27 = vector.multi_reduction <add>, %26, %cst_10 [1] : vector<64x16xf32> to vector<64xf32>
    %28 = vector.shape_cast %27 : vector<64xf32> to vector<64x1xf32>
    %cst_11 = arith.constant 1.600000e+01 : f32
    %29 = vector.broadcast %cst_11 : f32 to vector<64x1xf32>
    %30 = arith.divf %28, %29 : vector<64x1xf32>
    %cst_12 = arith.constant 9.99999974E-6 : f32
    %31 = vector.broadcast %cst_12 : f32 to vector<64x1xf32>
    %32 = arith.addf %30, %31 : vector<64x1xf32>
    %33 = math.rsqrt %32 : vector<64x1xf32>
    %34 = vector.broadcast %33 : vector<64x1xf32> to vector<64x16xf32>
    %35 = arith.mulf %25, %34 : vector<64x16xf32>
    %36 = vector.broadcast %3 : vector<1x16xf32> to vector<64x16xf32>
    %37 = arith.mulf %35, %36 : vector<64x16xf32>
    %38 = vector.broadcast %4 : vector<1x16xf32> to vector<64x16xf32>
    %39 = arith.addf %37, %38 : vector<64x16xf32>
    %c0_13 = arith.constant 0 : index
    %c0_14 = arith.constant 0 : index
    %40 = vector.load %arg3[%c0_13, %c0_14] : memref<16x16xf32, #tpu.memory_space<vmem>>, vector<16x16xf32>
    %cst_15 = arith.constant dense<0.000000e+00> : vector<64x16xf32>
    %41 = tpu.matmul %39, %40, %cst_15 {dimension_numbers = #tpu.dot_dimension_numbers<[1], [0], [0], [1], [0, 0, 1, 1], [], []>} : vector<64x16xf32>, vector<16x16xf32>, vector<64x16xf32> -> vector<64x16xf32>
    %42 = vector.shape_cast %41 : vector<64x16xf32> to vector<8x128xf32>
    %c0_16 = arith.constant 0 : index
    %c0_17 = arith.constant 0 : index
    %43 = vector.load %arg7[%c0_16, %c0_17] : memref<8x128xf32, #tpu.memory_space<vmem>>, vector<8x128xf32>
    tpu.vector_store %arg7[%c0_16, %c0_17], %42 {strides = array<i32>} : memref<8x128xf32, #tpu.memory_space<vmem>>, vector<8x128xf32>,
    %c0_18 = arith.constant 0 : index
    %c0_19 = arith.constant 0 : index
    %44 = vector.load %arg4[%c0_18, %c0_19] : memref<16x16xf32, #tpu.memory_space<vmem>>, vector<16x16xf32>
    %cst_20 = arith.constant dense<0.000000e+00> : vector<64x16xf32>
    %45 = tpu.matmul %41, %44, %cst_20 {dimension_numbers = #tpu.dot_dimension_numbers<[1], [0], [0], [1], [0, 0, 1, 1], [], []>} : vector<64x16xf32>, vector<16x16xf32>, vector<64x16xf32> -> vector<64x16xf32>
    %46 = vector.broadcast %5 : vector<1x16xf32> to vector<64x16xf32>
    %47 = arith.addf %45, %46 : vector<64x16xf32>
    %cst_21 = arith.constant 5.000000e-01 : f32
    %48 = vector.broadcast %cst_21 : f32 to vector<64x16xf32>
    %49 = arith.mulf %48, %47 : vector<64x16xf32>
    %cst_22 = arith.constant 0.707106769 : f32
    %50 = vector.broadcast %cst_22 : f32 to vector<64x16xf32>
    %51 = arith.mulf %47, %50 : vector<64x16xf32>
    %52 = math.erf %51 : vector<64x16xf32>
    %cst_23 = arith.constant 1.000000e+00 : f32
    %53 = vector.broadcast %cst_23 : f32 to vector<64x16xf32>
    %54 = arith.addf %53, %52 : vector<64x16xf32>
    %55 = arith.mulf %49, %54 : vector<64x16xf32>
    %cst_24 = arith.constant dense<0.000000e+00> : vector<64xf32>
    %56 = vector.multi_reduction <add>, %55, %cst_24 [1] : vector<64x16xf32> to vector<64xf32>
    %57 = vector.shape_cast %56 : vector<64xf32> to vector<64x1xf32>
    %cst_25 = arith.constant 1.600000e+01 : f32
    %58 = vector.broadcast %cst_25 : f32 to vector<64x1xf32>
    %59 = arith.divf %57, %58 : vector<64x1xf32>
    %60 = vector.broadcast %59 : vector<64x1xf32> to vector<64x16xf32>
    %61 = arith.subf %55, %60 : vector<64x16xf32>
    %62 = arith.mulf %61, %61 : vector<64x16xf32>
    %cst_26 = arith.constant dense<0.000000e+00> : vector<64xf32>
    %63 = vector.multi_reduction <add>, %62, %cst_26 [1] : vector<64x16xf32> to vector<64xf32>
    %64 = vector.shape_cast %63 : vector<64xf32> to vector<64x1xf32>
    %cst_27 = arith.constant 1.600000e+01 : f32
    %65 = vector.broadcast %cst_27 : f32 to vector<64x1xf32>
    %66 = arith.divf %64, %65 : vector<64x1xf32>
    %cst_28 = arith.constant 9.99999974E-6 : f32
    %67 = vector.broadcast %cst_28 : f32 to vector<64x1xf32>
    %68 = arith.addf %66, %67 : vector<64x1xf32>
    %69 = math.rsqrt %68 : vector<64x1xf32>
    %70 = vector.broadcast %69 : vector<64x1xf32> to vector<64x16xf32>
    %71 = arith.mulf %61, %70 : vector<64x16xf32>
    %72 = vector.broadcast %6 : vector<1x16xf32> to vector<64x16xf32>
    %73 = arith.mulf %71, %72 : vector<64x16xf32>
    %74 = vector.broadcast %7 : vector<1x16xf32> to vector<64x16xf32>
    %75 = arith.addf %73, %74 : vector<64x16xf32>
    %c0_29 = arith.constant 0 : index
    %c0_30 = arith.constant 0 : index
    %76 = vector.load %arg5[%c0_29, %c0_30] : memref<16x32xf32, #tpu.memory_space<vmem>>, vector<16x32xf32>
    %cst_31 = arith.constant dense<0.000000e+00> : vector<64x32xf32>
    %77 = tpu.matmul %75, %76, %cst_31 {dimension_numbers = #tpu.dot_dimension_numbers<[1], [0], [0], [1], [0, 0, 1, 1], [], []>} : vector<64x16xf32>, vector<16x32xf32>, vector<64x32xf32> -> vector<64x32xf32>
    %78 = vector.shape_cast %77 : vector<64x32xf32> to vector<16x128xf32>
    %c0_32 = arith.constant 0 : index
    %c0_33 = arith.constant 0 : index
    %79 = vector.load %arg8[%c0_32, %c0_33] : memref<16x128xf32, #tpu.memory_space<vmem>>, vector<16x128xf32>
    tpu.vector_store %arg8[%c0_32, %c0_33], %78 {strides = array<i32>} : memref<16x128xf32, #tpu.memory_space<vmem>>, vector<16x128xf32>,
    return
  }
  func.func @transform_0(%arg0: i32) -> (i32, i32) {
    %c0_i32 = arith.constant 0 : i32
    %c0_i32_0 = arith.constant 0 : i32
    return %arg0, %c0_i32 : i32, i32
  }
  func.func @transform_1(%arg0: i32) -> (i32, i32) {
    %c0_i32 = arith.constant 0 : i32
    %c0_i32_0 = arith.constant 0 : i32
    %c0_i32_1 = arith.constant 0 : i32
    return %c0_i32, %c0_i32_0 : i32, i32
  }
  func.func @transform_2(%arg0: i32) -> (i32, i32) {
    %c0_i32 = arith.constant 0 : i32
    %c0_i32_0 = arith.constant 0 : i32
    %c0_i32_1 = arith.constant 0 : i32
    return %c0_i32, %c0_i32_0 : i32, i32
  }
  func.func @transform_3(%arg0: i32) -> (i32, i32) {
    %c0_i32 = arith.constant 0 : i32
    %c0_i32_0 = arith.constant 0 : i32
    %c0_i32_1 = arith.constant 0 : i32
    return %c0_i32, %c0_i32_0 : i32, i32
  }
  func.func @transform_4(%arg0: i32) -> (i32, i32) {
    %c0_i32 = arith.constant 0 : i32
    %c0_i32_0 = arith.constant 0 : i32
    %c0_i32_1 = arith.constant 0 : i32
    return %c0_i32, %c0_i32_0 : i32, i32
  }
  func.func @transform_5(%arg0: i32) -> (i32, i32) {
    %c0_i32 = arith.constant 0 : i32
    %c0_i32_0 = arith.constant 0 : i32
    %c0_i32_1 = arith.constant 0 : i32
    return %c0_i32, %c0_i32_0 : i32, i32
  }
  func.func @transform_6(%arg0: i32) -> (i32, i32) {
    %c0_i32 = arith.constant 0 : i32
    %c0_i32_0 = arith.constant 0 : i32
    return %arg0, %c0_i32 : i32, i32
  }
  func.func @transform_7(%arg0: i32) -> (i32, i32) {
    %c0_i32 = arith.constant 0 : i32
    %c0_i32_0 = arith.constant 0 : i32
    return %arg0, %c0_i32 : i32, i32
  }
}

module attributes {stable_mosaic.version = 11 : i64} {
  func.func @ae_kernel(%arg0: i32, %arg1: memref<64x32xf32, #tpu.memory_space<vmem>>, %arg2: memref<32x16xf32, #tpu.memory_space<vmem>>, %arg3: memref<16x16xf32, #tpu.memory_space<vmem>>, %arg4: memref<16x16xf32, #tpu.memory_space<vmem>>, %arg5: memref<16x32xf32, #tpu.memory_space<vmem>>, %arg6: memref<6x16xf32, #tpu.memory_space<vmem>>, %arg7: memref<8x128xf32, #tpu.memory_space<vmem>>, %arg8: memref<16x128xf32, #tpu.memory_space<vmem>>) attributes {dimension_semantics = [#tpu.dimension_semantics<parallel>], iteration_bounds = array<i64: 1>, scalar_prefetch = 0 : i64, scratch_operands = 0 : i64, tpu.core_type = #tpu.core_type<tc>, window_params = [{transform_indices = @transform_0, window_bounds = array<i64: 64, 32>}, {pipeline_mode = #tpu.pipeline_mode<synchronous>, transform_indices = @transform_1, window_bounds = array<i64: 32, 16>}, {pipeline_mode = #tpu.pipeline_mode<synchronous>, transform_indices = @transform_2, window_bounds = array<i64: 16, 16>}, {pipeline_mode = #tpu.pipeline_mode<synchronous>, transform_indices = @transform_3, window_bounds = array<i64: 16, 16>}, {pipeline_mode = #tpu.pipeline_mode<synchronous>, transform_indices = @transform_4, window_bounds = array<i64: 16, 32>}, {pipeline_mode = #tpu.pipeline_mode<synchronous>, transform_indices = @transform_5, window_bounds = array<i64: 6, 16>}, {transform_indices = @transform_6, window_bounds = array<i64: 8, 128>}, {transform_indices = @transform_7, window_bounds = array<i64: 16, 128>}]} {
    %c0 = arith.constant 0 : index
    %c0_0 = arith.constant 0 : index
    %0 = vector.load %arg1[%c0, %c0_0] : memref<64x32xf32, #tpu.memory_space<vmem>>, vector<64x32xf32>
    %c0_1 = arith.constant 0 : index
    %c0_2 = arith.constant 0 : index
    %1 = vector.load %arg6[%c0_1, %c0_2] : memref<6x16xf32, #tpu.memory_space<vmem>>, vector<6x16xf32>
    %2 = vector.extract_strided_slice %1 {offsets = [0, 0], sizes = [1, 16], strides = [1, 1]} : vector<6x16xf32> to vector<1x16xf32>
    %3 = vector.extract_strided_slice %1 {offsets = [1, 0], sizes = [1, 16], strides = [1, 1]} : vector<6x16xf32> to vector<1x16xf32>
    %4 = vector.extract_strided_slice %1 {offsets = [2, 0], sizes = [1, 16], strides = [1, 1]} : vector<6x16xf32> to vector<1x16xf32>
    %5 = vector.extract_strided_slice %1 {offsets = [3, 0], sizes = [1, 16], strides = [1, 1]} : vector<6x16xf32> to vector<1x16xf32>
    %6 = vector.extract_strided_slice %1 {offsets = [4, 0], sizes = [1, 16], strides = [1, 1]} : vector<6x16xf32> to vector<1x16xf32>
    %7 = vector.extract_strided_slice %1 {offsets = [5, 0], sizes = [1, 16], strides = [1, 1]} : vector<6x16xf32> to vector<1x16xf32>
    %c0_3 = arith.constant 0 : index
    %c0_4 = arith.constant 0 : index
    %8 = vector.load %arg2[%c0_3, %c0_4] : memref<32x16xf32, #tpu.memory_space<vmem>>, vector<32x16xf32>
    %cst = arith.constant dense<0.000000e+00> : vector<64x16xf32>
    %9 = tpu.matmul %0, %8, %cst {dimension_numbers = #tpu.dot_dimension_numbers<[1], [0], [0], [1], [0, 0, 1, 1], [], []>} : vector<64x32xf32>, vector<32x16xf32>, vector<64x16xf32> -> vector<64x16xf32>
    %10 = vector.broadcast %2 : vector<1x16xf32> to vector<64x16xf32>
    %11 = arith.addf %9, %10 : vector<64x16xf32>
    %cst_5 = arith.constant 5.000000e-01 : f32
    %12 = vector.broadcast %cst_5 : f32 to vector<64x16xf32>
    %13 = arith.mulf %12, %11 : vector<64x16xf32>
    %cst_6 = arith.constant 0.707106769 : f32
    %14 = vector.broadcast %cst_6 : f32 to vector<64x16xf32>
    %15 = arith.mulf %11, %14 : vector<64x16xf32>
    %16 = math.erf %15 : vector<64x16xf32>
    %cst_7 = arith.constant 1.000000e+00 : f32
    %17 = vector.broadcast %cst_7 : f32 to vector<64x16xf32>
    %18 = arith.addf %17, %16 : vector<64x16xf32>
    %19 = arith.mulf %13, %18 : vector<64x16xf32>
    %cst_8 = arith.constant dense<0.000000e+00> : vector<64xf32>
    %20 = vector.multi_reduction <add>, %19, %cst_8 [1] : vector<64x16xf32> to vector<64xf32>
    %21 = vector.shape_cast %20 : vector<64xf32> to vector<64x1xf32>
    %cst_9 = arith.constant 1.600000e+01 : f32
    %22 = vector.broadcast %cst_9 : f32 to vector<64x1xf32>
    %23 = arith.divf %21, %22 : vector<64x1xf32>
    %24 = vector.broadcast %23 : vector<64x1xf32> to vector<64x16xf32>
    %25 = arith.subf %19, %24 : vector<64x16xf32>
    %26 = arith.mulf %25, %25 : vector<64x16xf32>
    %cst_10 = arith.constant dense<0.000000e+00> : vector<64xf32>
    %27 = vector.multi_reduction <add>, %26, %cst_10 [1] : vector<64x16xf32> to vector<64xf32>
    %28 = vector.shape_cast %27 : vector<64xf32> to vector<64x1xf32>
    %cst_11 = arith.constant 1.600000e+01 : f32
    %29 = vector.broadcast %cst_11 : f32 to vector<64x1xf32>
    %30 = arith.divf %28, %29 : vector<64x1xf32>
    %cst_12 = arith.constant 9.99999974E-6 : f32
    %31 = vector.broadcast %cst_12 : f32 to vector<64x1xf32>
    %32 = arith.addf %30, %31 : vector<64x1xf32>
    %33 = math.rsqrt %32 : vector<64x1xf32>
    %34 = vector.broadcast %33 : vector<64x1xf32> to vector<64x16xf32>
    %35 = arith.mulf %25, %34 : vector<64x16xf32>
    %36 = vector.broadcast %3 : vector<1x16xf32> to vector<64x16xf32>
    %37 = arith.mulf %35, %36 : vector<64x16xf32>
    %38 = vector.broadcast %4 : vector<1x16xf32> to vector<64x16xf32>
    %39 = arith.addf %37, %38 : vector<64x16xf32>
    %c0_13 = arith.constant 0 : index
    %c0_14 = arith.constant 0 : index
    %40 = vector.load %arg3[%c0_13, %c0_14] : memref<16x16xf32, #tpu.memory_space<vmem>>, vector<16x16xf32>
    %cst_15 = arith.constant dense<0.000000e+00> : vector<64x16xf32>
    %41 = tpu.matmul %39, %40, %cst_15 {dimension_numbers = #tpu.dot_dimension_numbers<[1], [0], [0], [1], [0, 0, 1, 1], [], []>} : vector<64x16xf32>, vector<16x16xf32>, vector<64x16xf32> -> vector<64x16xf32>
    %42 = vector.shape_cast %41 : vector<64x16xf32> to vector<8x128xf32>
    %c0_16 = arith.constant 0 : index
    %c0_17 = arith.constant 0 : index
    %43 = vector.load %arg7[%c0_16, %c0_17] : memref<8x128xf32, #tpu.memory_space<vmem>>, vector<8x128xf32>
    tpu.vector_store %arg7[%c0_16, %c0_17], %42 {strides = array<i32>} : memref<8x128xf32, #tpu.memory_space<vmem>>, vector<8x128xf32>,
    %c0_18 = arith.constant 0 : index
    %c0_19 = arith.constant 0 : index
    %44 = vector.load %arg4[%c0_18, %c0_19] : memref<16x16xf32, #tpu.memory_space<vmem>>, vector<16x16xf32>
    %cst_20 = arith.constant dense<0.000000e+00> : vector<64x16xf32>
    %45 = tpu.matmul %41, %44, %cst_20 {dimension_numbers = #tpu.dot_dimension_numbers<[1], [0], [0], [1], [0, 0, 1, 1], [], []>} : vector<64x16xf32>, vector<16x16xf32>, vector<64x16xf32> -> vector<64x16xf32>
    %46 = vector.broadcast %5 : vector<1x16xf32> to vector<64x16xf32>
    %47 = arith.addf %45, %46 : vector<64x16xf32>
    %cst_21 = arith.constant 5.000000e-01 : f32
    %48 = vector.broadcast %cst_21 : f32 to vector<64x16xf32>
    %49 = arith.mulf %48, %47 : vector<64x16xf32>
    %cst_22 = arith.constant 0.707106769 : f32
    %50 = vector.broadcast %cst_22 : f32 to vector<64x16xf32>
    %51 = arith.mulf %47, %50 : vector<64x16xf32>
    %52 = math.erf %51 : vector<64x16xf32>
    %cst_23 = arith.constant 1.000000e+00 : f32
    %53 = vector.broadcast %cst_23 : f32 to vector<64x16xf32>
    %54 = arith.addf %53, %52 : vector<64x16xf32>
    %55 = arith.mulf %49, %54 : vector<64x16xf32>
    %cst_24 = arith.constant dense<0.000000e+00> : vector<64xf32>
    %56 = vector.multi_reduction <add>, %55, %cst_24 [1] : vector<64x16xf32> to vector<64xf32>
    %57 = vector.shape_cast %56 : vector<64xf32> to vector<64x1xf32>
    %cst_25 = arith.constant 1.600000e+01 : f32
    %58 = vector.broadcast %cst_25 : f32 to vector<64x1xf32>
    %59 = arith.divf %57, %58 : vector<64x1xf32>
    %60 = vector.broadcast %59 : vector<64x1xf32> to vector<64x16xf32>
    %61 = arith.subf %55, %60 : vector<64x16xf32>
    %62 = arith.mulf %61, %61 : vector<64x16xf32>
    %cst_26 = arith.constant dense<0.000000e+00> : vector<64xf32>
    %63 = vector.multi_reduction <add>, %62, %cst_26 [1] : vector<64x16xf32> to vector<64xf32>
    %64 = vector.shape_cast %63 : vector<64xf32> to vector<64x1xf32>
    %cst_27 = arith.constant 1.600000e+01 : f32
    %65 = vector.broadcast %cst_27 : f32 to vector<64x1xf32>
    %66 = arith.divf %64, %65 : vector<64x1xf32>
    %cst_28 = arith.constant 9.99999974E-6 : f32
    %67 = vector.broadcast %cst_28 : f32 to vector<64x1xf32>
    %68 = arith.addf %66, %67 : vector<64x1xf32>
    %69 = math.rsqrt %68 : vector<64x1xf32>
    %70 = vector.broadcast %69 : vector<64x1xf32> to vector<64x16xf32>
    %71 = arith.mulf %61, %70 : vector<64x16xf32>
    %72 = vector.broadcast %6 : vector<1x16xf32> to vector<64x16xf32>
    %73 = arith.mulf %71, %72 : vector<64x16xf32>
    %74 = vector.broadcast %7 : vector<1x16xf32> to vector<64x16xf32>
    %75 = arith.addf %73, %74 : vector<64x16xf32>
    %c0_29 = arith.constant 0 : index
    %c0_30 = arith.constant 0 : index
    %76 = vector.load %arg5[%c0_29, %c0_30] : memref<16x32xf32, #tpu.memory_space<vmem>>, vector<16x32xf32>
    %cst_31 = arith.constant dense<0.000000e+00> : vector<64x32xf32>
    %77 = tpu.matmul %75, %76, %cst_31 {dimension_numbers = #tpu.dot_dimension_numbers<[1], [0], [0], [1], [0, 0, 1, 1], [], []>} : vector<64x16xf32>, vector<16x32xf32>, vector<64x32xf32> -> vector<64x32xf32>
    %78 = vector.shape_cast %77 : vector<64x32xf32> to vector<16x128xf32>
    %c0_32 = arith.constant 0 : index
    %c0_33 = arith.constant 0 : index
    %79 = vector.load %arg8[%c0_32, %c0_33] : memref<16x128xf32, #tpu.memory_space<vmem>>, vector<16x128xf32>
    tpu.vector_store %arg8[%c0_32, %c0_33], %78 {strides = array<i32>} : memref<16x128xf32, #tpu.memory_space<vmem>>, vector<16x128xf32>,
    return
  }
  func.func @transform_0(%arg0: i32) -> (i32, i32) {
    %c0_i32 = arith.constant 0 : i32
    %c0_i32_0 = arith.constant 0 : i32
    return %arg0, %c0_i32 : i32, i32
  }
  func.func @transform_1(%arg0: i32) -> (i32, i32) {
    %c0_i32 = arith.constant 0 : i32
    %c0_i32_0 = arith.constant 0 : i32
    %c0_i32_1 = arith.constant 0 : i32
    return %c0_i32, %c0_i32_0 : i32, i32
  }
  func.func @transform_2(%arg0: i32) -> (i32, i32) {
    %c0_i32 = arith.constant 0 : i32
    %c0_i32_0 = arith.constant 0 : i32
    %c0_i32_1 = arith.constant 0 : i32
    return %c0_i32, %c0_i32_0 : i32, i32
  }
  func.func @transform_3(%arg0: i32) -> (i32, i32) {
    %c0_i32 = arith.constant 0 : i32
    %c0_i32_0 = arith.constant 0 : i32
    %c0_i32_1 = arith.constant 0 : i32
    return %c0_i32, %c0_i32_0 : i32, i32
  }
  func.func @transform_4(%arg0: i32) -> (i32, i32) {
    %c0_i32 = arith.constant 0 : i32
    %c0_i32_0 = arith.constant 0 : i32
    %c0_i32_1 = arith.constant 0 : i32
    return %c0_i32, %c0_i32_0 : i32, i32
  }
  func.func @transform_5(%arg0: i32) -> (i32, i32) {
    %c0_i32 = arith.constant 0 : i32
    %c0_i32_0 = arith.constant 0 : i32
    %c0_i32_1 = arith.constant 0 : i32
    return %c0_i32, %c0_i32_0 : i32, i32
  }
  func.func @transform_6(%arg0: i32) -> (i32, i32) {
    %c0_i32 = arith.constant 0 : i32
    %c0_i32_0 = arith.constant 0 : i32
    return %arg0, %c0_i32 : i32, i32
  }
  func.func @transform_7(%arg0: i32) -> (i32, i32) {
    %c0_i32 = arith.constant 0 : i32
    %c0_i32_0 = arith.constant 0 : i32
    return %arg0, %c0_i32 : i32, i32
  }
}

module attributes {stable_mosaic.version = 11 : i64} {
  func.func @ae_kernel(%arg0: i32, %arg1: memref<64x32xf32, #tpu.memory_space<vmem>>, %arg2: memref<32x16xf32, #tpu.memory_space<vmem>>, %arg3: memref<16x16xf32, #tpu.memory_space<vmem>>, %arg4: memref<16x16xf32, #tpu.memory_space<vmem>>, %arg5: memref<16x32xf32, #tpu.memory_space<vmem>>, %arg6: memref<6x16xf32, #tpu.memory_space<vmem>>, %arg7: memref<64x16xf32, #tpu.memory_space<vmem>>, %arg8: memref<64x32xf32, #tpu.memory_space<vmem>>) attributes {dimension_semantics = [#tpu.dimension_semantics<parallel>], iteration_bounds = array<i64: 1>, scalar_prefetch = 0 : i64, scratch_operands = 0 : i64, tpu.core_type = #tpu.core_type<tc>, window_params = [{transform_indices = @transform_0, window_bounds = array<i64: 64, 32>}, {pipeline_mode = #tpu.pipeline_mode<synchronous>, transform_indices = @transform_1, window_bounds = array<i64: 32, 16>}, {pipeline_mode = #tpu.pipeline_mode<synchronous>, transform_indices = @transform_2, window_bounds = array<i64: 16, 16>}, {pipeline_mode = #tpu.pipeline_mode<synchronous>, transform_indices = @transform_3, window_bounds = array<i64: 16, 16>}, {pipeline_mode = #tpu.pipeline_mode<synchronous>, transform_indices = @transform_4, window_bounds = array<i64: 16, 32>}, {pipeline_mode = #tpu.pipeline_mode<synchronous>, transform_indices = @transform_5, window_bounds = array<i64: 6, 16>}, {transform_indices = @transform_6, window_bounds = array<i64: 64, 16>}, {transform_indices = @transform_7, window_bounds = array<i64: 64, 32>}]} {
    %c0 = arith.constant 0 : index
    %c0_0 = arith.constant 0 : index
    %0 = vector.load %arg1[%c0, %c0_0] : memref<64x32xf32, #tpu.memory_space<vmem>>, vector<64x32xf32>
    %c0_1 = arith.constant 0 : index
    %c0_2 = arith.constant 0 : index
    %1 = vector.load %arg6[%c0_1, %c0_2] : memref<6x16xf32, #tpu.memory_space<vmem>>, vector<6x16xf32>
    %2 = vector.extract_strided_slice %1 {offsets = [0, 0], sizes = [1, 16], strides = [1, 1]} : vector<6x16xf32> to vector<1x16xf32>
    %3 = vector.extract_strided_slice %1 {offsets = [1, 0], sizes = [1, 16], strides = [1, 1]} : vector<6x16xf32> to vector<1x16xf32>
    %4 = vector.extract_strided_slice %1 {offsets = [2, 0], sizes = [1, 16], strides = [1, 1]} : vector<6x16xf32> to vector<1x16xf32>
    %5 = vector.extract_strided_slice %1 {offsets = [3, 0], sizes = [1, 16], strides = [1, 1]} : vector<6x16xf32> to vector<1x16xf32>
    %6 = vector.extract_strided_slice %1 {offsets = [4, 0], sizes = [1, 16], strides = [1, 1]} : vector<6x16xf32> to vector<1x16xf32>
    %7 = vector.extract_strided_slice %1 {offsets = [5, 0], sizes = [1, 16], strides = [1, 1]} : vector<6x16xf32> to vector<1x16xf32>
    %c0_3 = arith.constant 0 : index
    %c0_4 = arith.constant 0 : index
    %8 = vector.load %arg2[%c0_3, %c0_4] : memref<32x16xf32, #tpu.memory_space<vmem>>, vector<32x16xf32>
    %cst = arith.constant dense<0.000000e+00> : vector<64x16xf32>
    %9 = tpu.matmul %0, %8, %cst {dimension_numbers = #tpu.dot_dimension_numbers<[1], [0], [0], [1], [0, 0, 1, 1], [], []>} : vector<64x32xf32>, vector<32x16xf32>, vector<64x16xf32> -> vector<64x16xf32>
    %10 = vector.broadcast %2 : vector<1x16xf32> to vector<64x16xf32>
    %11 = arith.addf %9, %10 : vector<64x16xf32>
    %cst_5 = arith.constant 5.000000e-01 : f32
    %12 = vector.broadcast %cst_5 : f32 to vector<64x16xf32>
    %13 = arith.mulf %12, %11 : vector<64x16xf32>
    %cst_6 = arith.constant 0.707106769 : f32
    %14 = vector.broadcast %cst_6 : f32 to vector<64x16xf32>
    %15 = arith.mulf %11, %14 : vector<64x16xf32>
    %16 = math.erf %15 : vector<64x16xf32>
    %cst_7 = arith.constant 1.000000e+00 : f32
    %17 = vector.broadcast %cst_7 : f32 to vector<64x16xf32>
    %18 = arith.addf %17, %16 : vector<64x16xf32>
    %19 = arith.mulf %13, %18 : vector<64x16xf32>
    %cst_8 = arith.constant dense<0.000000e+00> : vector<64xf32>
    %20 = vector.multi_reduction <add>, %19, %cst_8 [1] : vector<64x16xf32> to vector<64xf32>
    %21 = vector.shape_cast %20 : vector<64xf32> to vector<64x1xf32>
    %cst_9 = arith.constant 1.600000e+01 : f32
    %22 = vector.broadcast %cst_9 : f32 to vector<64x1xf32>
    %23 = arith.divf %21, %22 : vector<64x1xf32>
    %24 = vector.broadcast %23 : vector<64x1xf32> to vector<64x16xf32>
    %25 = arith.subf %19, %24 : vector<64x16xf32>
    %26 = arith.mulf %25, %25 : vector<64x16xf32>
    %cst_10 = arith.constant dense<0.000000e+00> : vector<64xf32>
    %27 = vector.multi_reduction <add>, %26, %cst_10 [1] : vector<64x16xf32> to vector<64xf32>
    %28 = vector.shape_cast %27 : vector<64xf32> to vector<64x1xf32>
    %cst_11 = arith.constant 1.600000e+01 : f32
    %29 = vector.broadcast %cst_11 : f32 to vector<64x1xf32>
    %30 = arith.divf %28, %29 : vector<64x1xf32>
    %cst_12 = arith.constant 9.99999974E-6 : f32
    %31 = vector.broadcast %cst_12 : f32 to vector<64x1xf32>
    %32 = arith.addf %30, %31 : vector<64x1xf32>
    %33 = math.rsqrt %32 : vector<64x1xf32>
    %34 = vector.broadcast %33 : vector<64x1xf32> to vector<64x16xf32>
    %35 = arith.mulf %25, %34 : vector<64x16xf32>
    %36 = vector.broadcast %3 : vector<1x16xf32> to vector<64x16xf32>
    %37 = arith.mulf %35, %36 : vector<64x16xf32>
    %38 = vector.broadcast %4 : vector<1x16xf32> to vector<64x16xf32>
    %39 = arith.addf %37, %38 : vector<64x16xf32>
    %c0_13 = arith.constant 0 : index
    %c0_14 = arith.constant 0 : index
    %40 = vector.load %arg3[%c0_13, %c0_14] : memref<16x16xf32, #tpu.memory_space<vmem>>, vector<16x16xf32>
    %cst_15 = arith.constant dense<0.000000e+00> : vector<64x16xf32>
    %41 = tpu.matmul %39, %40, %cst_15 {dimension_numbers = #tpu.dot_dimension_numbers<[1], [0], [0], [1], [0, 0, 1, 1], [], []>} : vector<64x16xf32>, vector<16x16xf32>, vector<64x16xf32> -> vector<64x16xf32>
    %c0_16 = arith.constant 0 : index
    %c0_17 = arith.constant 0 : index
    %42 = vector.load %arg7[%c0_16, %c0_17] : memref<64x16xf32, #tpu.memory_space<vmem>>, vector<64x16xf32>
    tpu.vector_store %arg7[%c0_16, %c0_17], %41 {strides = array<i32>} : memref<64x16xf32, #tpu.memory_space<vmem>>, vector<64x16xf32>,
    %c0_18 = arith.constant 0 : index
    %c0_19 = arith.constant 0 : index
    %43 = vector.load %arg4[%c0_18, %c0_19] : memref<16x16xf32, #tpu.memory_space<vmem>>, vector<16x16xf32>
    %cst_20 = arith.constant dense<0.000000e+00> : vector<64x16xf32>
    %44 = tpu.matmul %41, %43, %cst_20 {dimension_numbers = #tpu.dot_dimension_numbers<[1], [0], [0], [1], [0, 0, 1, 1], [], []>} : vector<64x16xf32>, vector<16x16xf32>, vector<64x16xf32> -> vector<64x16xf32>
    %45 = vector.broadcast %5 : vector<1x16xf32> to vector<64x16xf32>
    %46 = arith.addf %44, %45 : vector<64x16xf32>
    %cst_21 = arith.constant 5.000000e-01 : f32
    %47 = vector.broadcast %cst_21 : f32 to vector<64x16xf32>
    %48 = arith.mulf %47, %46 : vector<64x16xf32>
    %cst_22 = arith.constant 0.707106769 : f32
    %49 = vector.broadcast %cst_22 : f32 to vector<64x16xf32>
    %50 = arith.mulf %46, %49 : vector<64x16xf32>
    %51 = math.erf %50 : vector<64x16xf32>
    %cst_23 = arith.constant 1.000000e+00 : f32
    %52 = vector.broadcast %cst_23 : f32 to vector<64x16xf32>
    %53 = arith.addf %52, %51 : vector<64x16xf32>
    %54 = arith.mulf %48, %53 : vector<64x16xf32>
    %cst_24 = arith.constant dense<0.000000e+00> : vector<64xf32>
    %55 = vector.multi_reduction <add>, %54, %cst_24 [1] : vector<64x16xf32> to vector<64xf32>
    %56 = vector.shape_cast %55 : vector<64xf32> to vector<64x1xf32>
    %cst_25 = arith.constant 1.600000e+01 : f32
    %57 = vector.broadcast %cst_25 : f32 to vector<64x1xf32>
    %58 = arith.divf %56, %57 : vector<64x1xf32>
    %59 = vector.broadcast %58 : vector<64x1xf32> to vector<64x16xf32>
    %60 = arith.subf %54, %59 : vector<64x16xf32>
    %61 = arith.mulf %60, %60 : vector<64x16xf32>
    %cst_26 = arith.constant dense<0.000000e+00> : vector<64xf32>
    %62 = vector.multi_reduction <add>, %61, %cst_26 [1] : vector<64x16xf32> to vector<64xf32>
    %63 = vector.shape_cast %62 : vector<64xf32> to vector<64x1xf32>
    %cst_27 = arith.constant 1.600000e+01 : f32
    %64 = vector.broadcast %cst_27 : f32 to vector<64x1xf32>
    %65 = arith.divf %63, %64 : vector<64x1xf32>
    %cst_28 = arith.constant 9.99999974E-6 : f32
    %66 = vector.broadcast %cst_28 : f32 to vector<64x1xf32>
    %67 = arith.addf %65, %66 : vector<64x1xf32>
    %68 = math.rsqrt %67 : vector<64x1xf32>
    %69 = vector.broadcast %68 : vector<64x1xf32> to vector<64x16xf32>
    %70 = arith.mulf %60, %69 : vector<64x16xf32>
    %71 = vector.broadcast %6 : vector<1x16xf32> to vector<64x16xf32>
    %72 = arith.mulf %70, %71 : vector<64x16xf32>
    %73 = vector.broadcast %7 : vector<1x16xf32> to vector<64x16xf32>
    %74 = arith.addf %72, %73 : vector<64x16xf32>
    %c0_29 = arith.constant 0 : index
    %c0_30 = arith.constant 0 : index
    %75 = vector.load %arg5[%c0_29, %c0_30] : memref<16x32xf32, #tpu.memory_space<vmem>>, vector<16x32xf32>
    %cst_31 = arith.constant dense<0.000000e+00> : vector<64x32xf32>
    %76 = tpu.matmul %74, %75, %cst_31 {dimension_numbers = #tpu.dot_dimension_numbers<[1], [0], [0], [1], [0, 0, 1, 1], [], []>} : vector<64x16xf32>, vector<16x32xf32>, vector<64x32xf32> -> vector<64x32xf32>
    %c0_32 = arith.constant 0 : index
    %c0_33 = arith.constant 0 : index
    %77 = vector.load %arg8[%c0_32, %c0_33] : memref<64x32xf32, #tpu.memory_space<vmem>>, vector<64x32xf32>
    tpu.vector_store %arg8[%c0_32, %c0_33], %76 {strides = array<i32>} : memref<64x32xf32, #tpu.memory_space<vmem>>, vector<64x32xf32>,
    return
  }
  func.func @transform_0(%arg0: i32) -> (i32, i32) {
    %c0_i32 = arith.constant 0 : i32
    %c0_i32_0 = arith.constant 0 : i32
    return %arg0, %c0_i32 : i32, i32
  }
  func.func @transform_1(%arg0: i32) -> (i32, i32) {
    %c0_i32 = arith.constant 0 : i32
    %c0_i32_0 = arith.constant 0 : i32
    %c0_i32_1 = arith.constant 0 : i32
    return %c0_i32, %c0_i32_0 : i32, i32
  }
  func.func @transform_2(%arg0: i32) -> (i32, i32) {
    %c0_i32 = arith.constant 0 : i32
    %c0_i32_0 = arith.constant 0 : i32
    %c0_i32_1 = arith.constant 0 : i32
    return %c0_i32, %c0_i32_0 : i32, i32
  }
  func.func @transform_3(%arg0: i32) -> (i32, i32) {
    %c0_i32 = arith.constant 0 : i32
    %c0_i32_0 = arith.constant 0 : i32
    %c0_i32_1 = arith.constant 0 : i32
    return %c0_i32, %c0_i32_0 : i32, i32
  }
  func.func @transform_4(%arg0: i32) -> (i32, i32) {
    %c0_i32 = arith.constant 0 : i32
    %c0_i32_0 = arith.constant 0 : i32
    %c0_i32_1 = arith.constant 0 : i32
    return %c0_i32, %c0_i32_0 : i32, i32
  }
  func.func @transform_5(%arg0: i32) -> (i32, i32) {
    %c0_i32 = arith.constant 0 : i32
    %c0_i32_0 = arith.constant 0 : i32
    %c0_i32_1 = arith.constant 0 : i32
    return %c0_i32, %c0_i32_0 : i32, i32
  }
  func.func @transform_6(%arg0: i32) -> (i32, i32) {
    %c0_i32 = arith.constant 0 : i32
    %c0_i32_0 = arith.constant 0 : i32
    return %arg0, %c0_i32 : i32, i32
  }
  func.func @transform_7(%arg0: i32) -> (i32, i32) {
    %c0_i32 = arith.constant 0 : i32
    %c0_i32_0 = arith.constant 0 : i32
    return %arg0, %c0_i32 : i32, i32
  }
}

module attributes {stable_mosaic.version = 11 : i64} {
  func.func @ae_kernel(%arg0: i32, %arg1: memref<64x32xf32, #tpu.memory_space<vmem>>, %arg2: memref<32x16xf32, #tpu.memory_space<vmem>>, %arg3: memref<16x16xf32, #tpu.memory_space<vmem>>, %arg4: memref<16x16xf32, #tpu.memory_space<vmem>>, %arg5: memref<16x32xf32, #tpu.memory_space<vmem>>, %arg6: memref<6x16xf32, #tpu.memory_space<vmem>>, %arg7: memref<64x16xf32, #tpu.memory_space<vmem>>, %arg8: memref<64x32xf32, #tpu.memory_space<vmem>>) attributes {dimension_semantics = [#tpu.dimension_semantics<parallel>], iteration_bounds = array<i64: 1>, scalar_prefetch = 0 : i64, scratch_operands = 0 : i64, tpu.core_type = #tpu.core_type<tc>, window_params = [{transform_indices = @transform_0, window_bounds = array<i64: 64, 32>}, {pipeline_mode = #tpu.pipeline_mode<synchronous>, transform_indices = @transform_1, window_bounds = array<i64: 32, 16>}, {pipeline_mode = #tpu.pipeline_mode<synchronous>, transform_indices = @transform_2, window_bounds = array<i64: 16, 16>}, {pipeline_mode = #tpu.pipeline_mode<synchronous>, transform_indices = @transform_3, window_bounds = array<i64: 16, 16>}, {pipeline_mode = #tpu.pipeline_mode<synchronous>, transform_indices = @transform_4, window_bounds = array<i64: 16, 32>}, {pipeline_mode = #tpu.pipeline_mode<synchronous>, transform_indices = @transform_5, window_bounds = array<i64: 6, 16>}, {transform_indices = @transform_6, window_bounds = array<i64: 64, 16>}, {transform_indices = @transform_7, window_bounds = array<i64: 64, 32>}]} {
    %c0 = arith.constant 0 : index
    %c0_0 = arith.constant 0 : index
    %0 = vector.load %arg1[%c0, %c0_0] : memref<64x32xf32, #tpu.memory_space<vmem>>, vector<64x32xf32>
    %c0_1 = arith.constant 0 : index
    %c0_2 = arith.constant 0 : index
    %1 = vector.load %arg6[%c0_1, %c0_2] : memref<6x16xf32, #tpu.memory_space<vmem>>, vector<6x16xf32>
    %2 = vector.extract_strided_slice %1 {offsets = [0, 0], sizes = [1, 16], strides = [1, 1]} : vector<6x16xf32> to vector<1x16xf32>
    %3 = vector.extract_strided_slice %1 {offsets = [1, 0], sizes = [1, 16], strides = [1, 1]} : vector<6x16xf32> to vector<1x16xf32>
    %4 = vector.extract_strided_slice %1 {offsets = [2, 0], sizes = [1, 16], strides = [1, 1]} : vector<6x16xf32> to vector<1x16xf32>
    %5 = vector.extract_strided_slice %1 {offsets = [3, 0], sizes = [1, 16], strides = [1, 1]} : vector<6x16xf32> to vector<1x16xf32>
    %6 = vector.extract_strided_slice %1 {offsets = [4, 0], sizes = [1, 16], strides = [1, 1]} : vector<6x16xf32> to vector<1x16xf32>
    %7 = vector.extract_strided_slice %1 {offsets = [5, 0], sizes = [1, 16], strides = [1, 1]} : vector<6x16xf32> to vector<1x16xf32>
    %c0_3 = arith.constant 0 : index
    %c0_4 = arith.constant 0 : index
    %8 = vector.load %arg2[%c0_3, %c0_4] : memref<32x16xf32, #tpu.memory_space<vmem>>, vector<32x16xf32>
    %cst = arith.constant dense<0.000000e+00> : vector<64x16xf32>
    %9 = tpu.matmul %0, %8, %cst {dimension_numbers = #tpu.dot_dimension_numbers<[1], [0], [0], [1], [0, 0, 1, 1], [], []>} : vector<64x32xf32>, vector<32x16xf32>, vector<64x16xf32> -> vector<64x16xf32>
    %10 = vector.broadcast %2 : vector<1x16xf32> to vector<64x16xf32>
    %11 = arith.addf %9, %10 : vector<64x16xf32>
    %cst_5 = arith.constant 5.000000e-01 : f32
    %12 = vector.broadcast %cst_5 : f32 to vector<64x16xf32>
    %13 = arith.mulf %12, %11 : vector<64x16xf32>
    %cst_6 = arith.constant 0.707106769 : f32
    %14 = vector.broadcast %cst_6 : f32 to vector<64x16xf32>
    %15 = arith.mulf %11, %14 : vector<64x16xf32>
    %16 = math.erf %15 : vector<64x16xf32>
    %cst_7 = arith.constant 1.000000e+00 : f32
    %17 = vector.broadcast %cst_7 : f32 to vector<64x16xf32>
    %18 = arith.addf %17, %16 : vector<64x16xf32>
    %19 = arith.mulf %13, %18 : vector<64x16xf32>
    %cst_8 = arith.constant dense<0.000000e+00> : vector<64xf32>
    %20 = vector.multi_reduction <add>, %19, %cst_8 [1] : vector<64x16xf32> to vector<64xf32>
    %21 = vector.shape_cast %20 : vector<64xf32> to vector<64x1xf32>
    %cst_9 = arith.constant 1.600000e+01 : f32
    %22 = vector.broadcast %cst_9 : f32 to vector<64x1xf32>
    %23 = arith.divf %21, %22 : vector<64x1xf32>
    %24 = vector.broadcast %23 : vector<64x1xf32> to vector<64x16xf32>
    %25 = arith.subf %19, %24 : vector<64x16xf32>
    %26 = arith.mulf %25, %25 : vector<64x16xf32>
    %cst_10 = arith.constant dense<0.000000e+00> : vector<64xf32>
    %27 = vector.multi_reduction <add>, %26, %cst_10 [1] : vector<64x16xf32> to vector<64xf32>
    %28 = vector.shape_cast %27 : vector<64xf32> to vector<64x1xf32>
    %cst_11 = arith.constant 1.600000e+01 : f32
    %29 = vector.broadcast %cst_11 : f32 to vector<64x1xf32>
    %30 = arith.divf %28, %29 : vector<64x1xf32>
    %cst_12 = arith.constant 9.99999974E-6 : f32
    %31 = vector.broadcast %cst_12 : f32 to vector<64x1xf32>
    %32 = arith.addf %30, %31 : vector<64x1xf32>
    %33 = math.rsqrt %32 : vector<64x1xf32>
    %34 = vector.broadcast %33 : vector<64x1xf32> to vector<64x16xf32>
    %35 = arith.mulf %25, %34 : vector<64x16xf32>
    %36 = vector.broadcast %3 : vector<1x16xf32> to vector<64x16xf32>
    %37 = arith.mulf %35, %36 : vector<64x16xf32>
    %38 = vector.broadcast %4 : vector<1x16xf32> to vector<64x16xf32>
    %39 = arith.addf %37, %38 : vector<64x16xf32>
    %c0_13 = arith.constant 0 : index
    %c0_14 = arith.constant 0 : index
    %40 = vector.load %arg3[%c0_13, %c0_14] : memref<16x16xf32, #tpu.memory_space<vmem>>, vector<16x16xf32>
    %cst_15 = arith.constant dense<0.000000e+00> : vector<64x16xf32>
    %41 = tpu.matmul %39, %40, %cst_15 {dimension_numbers = #tpu.dot_dimension_numbers<[1], [0], [0], [1], [0, 0, 1, 1], [], []>} : vector<64x16xf32>, vector<16x16xf32>, vector<64x16xf32> -> vector<64x16xf32>
    %c0_16 = arith.constant 0 : index
    %c0_17 = arith.constant 0 : index
    %42 = vector.load %arg7[%c0_16, %c0_17] : memref<64x16xf32, #tpu.memory_space<vmem>>, vector<64x16xf32>
    tpu.vector_store %arg7[%c0_16, %c0_17], %41 {strides = array<i32>} : memref<64x16xf32, #tpu.memory_space<vmem>>, vector<64x16xf32>,
    %c0_18 = arith.constant 0 : index
    %c0_19 = arith.constant 0 : index
    %43 = vector.load %arg4[%c0_18, %c0_19] : memref<16x16xf32, #tpu.memory_space<vmem>>, vector<16x16xf32>
    %cst_20 = arith.constant dense<0.000000e+00> : vector<64x16xf32>
    %44 = tpu.matmul %41, %43, %cst_20 {dimension_numbers = #tpu.dot_dimension_numbers<[1], [0], [0], [1], [0, 0, 1, 1], [], []>} : vector<64x16xf32>, vector<16x16xf32>, vector<64x16xf32> -> vector<64x16xf32>
    %45 = vector.broadcast %5 : vector<1x16xf32> to vector<64x16xf32>
    %46 = arith.addf %44, %45 : vector<64x16xf32>
    %cst_21 = arith.constant 5.000000e-01 : f32
    %47 = vector.broadcast %cst_21 : f32 to vector<64x16xf32>
    %48 = arith.mulf %47, %46 : vector<64x16xf32>
    %cst_22 = arith.constant 0.707106769 : f32
    %49 = vector.broadcast %cst_22 : f32 to vector<64x16xf32>
    %50 = arith.mulf %46, %49 : vector<64x16xf32>
    %51 = math.erf %50 : vector<64x16xf32>
    %cst_23 = arith.constant 1.000000e+00 : f32
    %52 = vector.broadcast %cst_23 : f32 to vector<64x16xf32>
    %53 = arith.addf %52, %51 : vector<64x16xf32>
    %54 = arith.mulf %48, %53 : vector<64x16xf32>
    %cst_24 = arith.constant dense<0.000000e+00> : vector<64xf32>
    %55 = vector.multi_reduction <add>, %54, %cst_24 [1] : vector<64x16xf32> to vector<64xf32>
    %56 = vector.shape_cast %55 : vector<64xf32> to vector<64x1xf32>
    %cst_25 = arith.constant 1.600000e+01 : f32
    %57 = vector.broadcast %cst_25 : f32 to vector<64x1xf32>
    %58 = arith.divf %56, %57 : vector<64x1xf32>
    %59 = vector.broadcast %58 : vector<64x1xf32> to vector<64x16xf32>
    %60 = arith.subf %54, %59 : vector<64x16xf32>
    %61 = arith.mulf %60, %60 : vector<64x16xf32>
    %cst_26 = arith.constant dense<0.000000e+00> : vector<64xf32>
    %62 = vector.multi_reduction <add>, %61, %cst_26 [1] : vector<64x16xf32> to vector<64xf32>
    %63 = vector.shape_cast %62 : vector<64xf32> to vector<64x1xf32>
    %cst_27 = arith.constant 1.600000e+01 : f32
    %64 = vector.broadcast %cst_27 : f32 to vector<64x1xf32>
    %65 = arith.divf %63, %64 : vector<64x1xf32>
    %cst_28 = arith.constant 9.99999974E-6 : f32
    %66 = vector.broadcast %cst_28 : f32 to vector<64x1xf32>
    %67 = arith.addf %65, %66 : vector<64x1xf32>
    %68 = math.rsqrt %67 : vector<64x1xf32>
    %69 = vector.broadcast %68 : vector<64x1xf32> to vector<64x16xf32>
    %70 = arith.mulf %60, %69 : vector<64x16xf32>
    %71 = vector.broadcast %6 : vector<1x16xf32> to vector<64x16xf32>
    %72 = arith.mulf %70, %71 : vector<64x16xf32>
    %73 = vector.broadcast %7 : vector<1x16xf32> to vector<64x16xf32>
    %74 = arith.addf %72, %73 : vector<64x16xf32>
    %c0_29 = arith.constant 0 : index
    %c0_30 = arith.constant 0 : index
    %75 = vector.load %arg5[%c0_29, %c0_30] : memref<16x32xf32, #tpu.memory_space<vmem>>, vector<16x32xf32>
    %cst_31 = arith.constant dense<0.000000e+00> : vector<64x32xf32>
    %76 = tpu.matmul %74, %75, %cst_31 {dimension_numbers = #tpu.dot_dimension_numbers<[1], [0], [0], [1], [0, 0, 1, 1], [], []>} : vector<64x16xf32>, vector<16x32xf32>, vector<64x32xf32> -> vector<64x32xf32>
    %c0_32 = arith.constant 0 : index
    %c0_33 = arith.constant 0 : index
    %77 = vector.load %arg8[%c0_32, %c0_33] : memref<64x32xf32, #tpu.memory_space<vmem>>, vector<64x32xf32>
    tpu.vector_store %arg8[%c0_32, %c0_33], %76 {strides = array<i32>} : memref<64x32xf32, #tpu.memory_space<vmem>>, vector<64x32xf32>,
    return
  }
  func.func @transform_0(%arg0: i32) -> (i32, i32) {
    %c0_i32 = arith.constant 0 : i32
    %c0_i32_0 = arith.constant 0 : i32
    return %arg0, %c0_i32 : i32, i32
  }
  func.func @transform_1(%arg0: i32) -> (i32, i32) {
    %c0_i32 = arith.constant 0 : i32
    %c0_i32_0 = arith.constant 0 : i32
    %c0_i32_1 = arith.constant 0 : i32
    return %c0_i32, %c0_i32_0 : i32, i32
  }
  func.func @transform_2(%arg0: i32) -> (i32, i32) {
    %c0_i32 = arith.constant 0 : i32
    %c0_i32_0 = arith.constant 0 : i32
    %c0_i32_1 = arith.constant 0 : i32
    return %c0_i32, %c0_i32_0 : i32, i32
  }
  func.func @transform_3(%arg0: i32) -> (i32, i32) {
    %c0_i32 = arith.constant 0 : i32
    %c0_i32_0 = arith.constant 0 : i32
    %c0_i32_1 = arith.constant 0 : i32
    return %c0_i32, %c0_i32_0 : i32, i32
  }
  func.func @transform_4(%arg0: i32) -> (i32, i32) {
    %c0_i32 = arith.constant 0 : i32
    %c0_i32_0 = arith.constant 0 : i32
    %c0_i32_1 = arith.constant 0 : i32
    return %c0_i32, %c0_i32_0 : i32, i32
  }
  func.func @transform_5(%arg0: i32) -> (i32, i32) {
    %c0_i32 = arith.constant 0 : i32
    %c0_i32_0 = arith.constant 0 : i32
    %c0_i32_1 = arith.constant 0 : i32
    return %c0_i32, %c0_i32_0 : i32, i32
  }
  func.func @transform_6(%arg0: i32) -> (i32, i32) {
    %c0_i32 = arith.constant 0 : i32
    %c0_i32_0 = arith.constant 0 : i32
    return %arg0, %c0_i32 : i32, i32
  }
  func.func @transform_7(%arg0: i32) -> (i32, i32) {
    %c0_i32 = arith.constant 0 : i32
    %c0_i32_0 = arith.constant 0 : i32
    return %arg0, %c0_i32 : i32, i32
  }
}

</mosaic_0001>

<bundles_post_ra>
// kernel: tpu_custom_call.1
= control target key start
LH: loop header
LB: loop body
LE: loop exit
PB: predicated region body
PF: predicated region fallthrough
CT: control target
= control target key end

     0   :  { %vm42_vm0 = vcmask 261120   ;;  %v38_v14 = vlaneseq  ;;  %vm212_vm1 = vcmask 130048   ;;  %s1478_s1 = inlined_call_operand.vmem [shape: f32[32,16], index: 1, kind: input, shape index: {}]   ;;  %s1479_s0 = inlined_call_operand.vmem [shape: f32[64,32], index: 0, kind: input, shape index: {}]   ;;  %s1480_s5 = inlined_call_operand.vmem [shape: f32[6,16], index: 5, kind: input, shape index: {}]   ;;  %s1481_s2 = inlined_call_operand.vmem [shape: f32[16,16], index: 2, kind: input, shape index: {}]   ;;  %s1482_s3 = inlined_call_operand.vmem [shape: f32[16,16], index: 3, kind: input, shape index: {}]   ;;  %s1483_s6 = inlined_call_operand.vmem [shape: f32[64,16], index: 6, kind: output, shape index: {0}]   ;;  %s1484_s4 = inlined_call_operand.vmem [shape: f32[16,32], index: 4, kind: input, shape index: {}]   ;;  %s1485_s7 = inlined_call_operand.vmem [shape: f32[64,32], index: 7, kind: output, shape index: {1}]  }
   0x1   :  { %v34_v0 = vld [vmem:[%s1478_s1] sm:$0xff]  ;;  %v35_v1 = vld [vmem:[%s1478_s1 + $0x8] sm:$0xff]  ;;  %v36_v2 = vld [vmem:[%s1478_s1 + $0x10] sm:$0xff] }
   0x2   :  { %v1073_v3 = vpack.c.bf16 %v35_v1, %v34_v0  ;;  %v37_v4 = vld [vmem:[%s1478_s1 + $0x18] sm:$0xff]  ;;  %v25_v5 = vld [vmem:[%s1479_s0] sm:$0xff]  ;;  %v26_v7 = vld [vmem:[%s1479_s0 + $0x8] sm:$0xff]  ;;  %v1241_v15 = vshrl.u32 %v38_v14, 7 }
   0x3   :  { %v1077_v6 = vpack.c.bf16 %v37_v4, %v36_v2  ;;  %1013 = vmatprep.mubr.msk.f32.mxu0 %vm42_vm0, %v25_v5  ;;  %v27_v8 = vld [vmem:[%s1479_s0 + $0x10] sm:$0xff]  ;;  %v28_v9 = vld [vmem:[%s1479_s0 + $0x18] sm:$0xff]  ;;  %v29_v10 = vld [vmem:[%s1479_s0 + $0x20] sm:$0xff] }
   0x4   :  { %1074 = vmatprep.subr.bf16.mxu0 %v1073_v3  ;;  %v30_v11 = vld [vmem:[%s1479_s0 + $0x28] sm:$0xff]  ;;  %v31_v12 = vld [vmem:[%s1479_s0 + $0x30] sm:$0xff]  ;;  %v32_v13 = vld [vmem:[%s1479_s0 + $0x38] sm:$0xff]  ;;  %v40_v16 = vsub.s32 0, %v1241_v15 }
   0x5   :  { %1076 = vmatpush3.bf16.msra.mxu0 %v1073_v3  ;;  %v1247_v17 = vld [vmem:[%s1480_s5] sm:$0x3f] }
   0x6   :  { %1078 = vmatprep.subr.bf16.mxu0 %v1077_v6  ;;  %v41_v18 = vrot.slane %v1247_v17, %v40_v16 }
   0x9   :  { %1080 = vmatpush3.bf16.msra.mxu0 %v1077_v6 }
   0xc   :  { %1014 = vmatmul.mubr.msk.f32.vlgmr.msra.gmra.mrb[0].mxu0 %vm42_vm0, %v26_v7 }
   0xd   :  { %1016 = vmatprep.mubr.msk.f32.mxu0 %vm42_vm0, %v27_v8 }
  0x10   :  { %1017 = vmatmul.mubr.msk.f32.gmra.mrb[2].mxu0 %vm42_vm0, %v28_v9 }
  0x11   :  { %1019 = vmatprep.mubr.msk.f32.mxu0 %vm42_vm0, %v29_v10 }
  0x14   :  { %1020 = vmatmul.mubr.msk.f32.gmra.mrb[4].mxu0 %vm42_vm0, %v30_v11 }
  0x15   :  { %1022 = vmatprep.mubr.msk.f32.mxu0 %vm42_vm0, %v31_v12 }
  0x18   :  { %1023 = vmatmul.mubr.msk.f32.gmra.mrb[6].mxu0 %vm42_vm0, %v32_v13 }
  0xdf   :  { %v1015_v19 = vpop.f32.mrb[0].mxu0 }
  0xe0   :  { %v139_v20 = vadd.f32 %v1015_v19, %v41_v18  ;;  %v133_v21 = vpop.f32.mrb[1].mxu0 }
  0xe1   :  { %v134_v22 = vadd.f32 %v133_v21, %v41_v18 }
  0xe2   :  { %v181_v23 = vmul.f32 0.70710677, %v139_v20  ;;  %v173_v49 = vmul.f32 0.5, %v139_v20 }
  0xe3   :  { %v180_v24 = vmul.f32 0.70710677, %v134_v22  ;;  %v1018_v25 = vpop.f32.mrb[2].mxu0  ;;  %v172_v45 = vmul.f32 0.5, %v134_v22 }
  0xe4   :  { %1093 = verf.f32 %v181_v23  ;;  %v149_v26 = vadd.f32 %v1018_v25, %v41_v18  ;;  %v143_v27 = vpop.f32.mrb[3].mxu0 }
  0xe5   :  { %1095 = verf.f32 %v180_v24  ;;  %v144_v28 = vadd.f32 %v143_v27, %v41_v18 }
  0xe6   :  { %v183_v29 = vmul.f32 0.70710677, %v149_v26  ;;  %v175_v57 = vmul.f32 0.5, %v149_v26 }
  0xe7   :  { %v182_v30 = vmul.f32 0.70710677, %v144_v28  ;;  %v1021_v31 = vpop.f32.mrb[4].mxu0  ;;  %v174_v53 = vmul.f32 0.5, %v144_v28 }
  0xe8   :  { %1097 = verf.f32 %v183_v29  ;;  %v159_v32 = vadd.f32 %v1021_v31, %v41_v18  ;;  %v153_v33 = vpop.f32.mrb[5].mxu0 }
  0xe9   :  { %1099 = verf.f32 %v182_v30  ;;  %v154_v34 = vadd.f32 %v153_v33, %v41_v18 }
  0xea   :  { %v185_v35 = vmul.f32 0.70710677, %v159_v32  ;;  %v177_v4 = vmul.f32 0.5, %v159_v32 }
  0xeb   :  { %v184_v36 = vmul.f32 0.70710677, %v154_v34  ;;  %v1024_v37 = vpop.f32.mrb[6].mxu0  ;;  %v176_v61 = vmul.f32 0.5, %v154_v34 }
  0xec   :  { %1101 = verf.f32 %v185_v35  ;;  %v169_v38 = vadd.f32 %v1024_v37, %v41_v18  ;;  %v163_v39 = vpop.f32.mrb[7].mxu0 }
  0xed   :  { %1103 = verf.f32 %v184_v36  ;;  %v164_v40 = vadd.f32 %v163_v39, %v41_v18 }
  0xee   :  { %v1094_v41 = vpop.eup %1093  ;;  %v187_v42 = vmul.f32 0.70710677, %v169_v38  ;;  %v179_v13 = vmul.f32 0.5, %v169_v38 }
  0xef   :  { %v1096_v43 = vpop.eup %1095  ;;  %v186_v44 = vmul.f32 0.70710677, %v164_v40  ;;  %v197_v47 = vadd.f32 1.0, %v1094_v41  ;;  %v178_v7 = vmul.f32 0.5, %v164_v40 }
  0xf0   :  { %1105 = verf.f32 %v187_v42  ;;  %v196_v46 = vadd.f32 1.0, %v1096_v43 }
  0xf1   :  { %1107 = verf.f32 %v186_v44  ;;  %v205_v56 = vmul.f32 %v197_v47, %v173_v49 }
  0xf2   :  { %v1098_v48 = vpop.eup %1097  ;;  %v204_v50 = vmul.f32 %v196_v46, %v172_v45 }
  0xf3   :  { %v1100_v51 = vpop.eup %1099  ;;  %v199_v52 = vadd.f32 1.0, %v1098_v48  ;;  %v216_v0 = vsel %vm212_vm1, %v205_v56, 0.0 }
  0xf4   :  { %v213_v54 = vsel %vm212_vm1, %v204_v50, 0.0  ;;  %v198_v55 = vadd.f32 1.0, %v1100_v51 }
  0xf5   :  { %214 = vadd.xlane.f32.xlu0 %v213_v54  ;;  %v207_v62 = vmul.f32 %v199_v52, %v175_v57 }
  0xf6   :  { %v1102_v58 = vpop.eup %1101  ;;  %v206_v59 = vmul.f32 %v198_v55, %v174_v53 }
  0xf7   :  { %v1104_v60 = vpop.eup %1103  ;;  %v201_v2 = vadd.f32 1.0, %v1102_v58  ;;  %v222_v8 = vsel %vm212_vm1, %v207_v62, 0.0 }
  0xf8   :  { %v219_v63 = vsel %vm212_vm1, %v206_v59, 0.0  ;;  %v200_v1 = vadd.f32 1.0, %v1104_v60 }
  0xf9   :  { %220 = vadd.xlane.f32.xlu1 %v219_v63  ;;  %217 = vadd.xlane.f32.xlu0 %v216_v0  ;;  %v209_v10 = vmul.f32 %v201_v2, %v177_v4  ;;  %v481_v0 = vld [vmem:[%s1482_s3] sm:$0xff] }
  0xfa   :  { %v1106_v3 = vpop.eup %1105  ;;  %v208_v5 = vmul.f32 %v200_v1, %v176_v61  ;;  %v342_v61 = vld [vmem:[%s1481_s2] sm:$0xff]  ;;  %v482_v1 = vld [vmem:[%s1482_s3 + $0x8] sm:$0xff] }
  0xfb   :  { %v1108_v6 = vpop.eup %1107  ;;  %v203_v12 = vadd.f32 1.0, %v1106_v3  ;;  %v228_v16 = vsel %vm212_vm1, %v209_v10, 0.0  ;;  %v1085_v2 = vpack.c.bf16 %v482_v1, %v481_v0 }
  0xfc   :  { %v225_v9 = vsel %vm212_vm1, %v208_v5, 0.0  ;;  %v202_v11 = vadd.f32 1.0, %v1108_v6 }
  0xfd   :  { %223 = vadd.xlane.f32.xlu1 %v222_v8  ;;  %226 = vadd.xlane.f32.xlu0 %v225_v9  ;;  %v211_v19 = vmul.f32 %v203_v12, %v179_v13 }
  0xfe   :  { %v210_v14 = vmul.f32 %v202_v11, %v178_v7 }
  0xff   :  { %v234_v20 = vsel %vm212_vm1, %v211_v19, 0.0 }
 0x100   :  { %v231_v18 = vsel %vm212_vm1, %v210_v14, 0.0 }
 0x101   :  { %229 = vadd.xlane.f32.xlu1 %v228_v16  ;;  %232 = vadd.xlane.f32.xlu0 %v231_v18  ;;  %v320_v18 = vsub.s32 1, %v1241_v15 }
 0x105   :  { %235 = vadd.xlane.f32.xlu1 %v234_v20 }
 0x182   :  { %v215_v21 = vpop.xlane.xlu0 %214 }
 0x183   :  { %v238_v22 = vmul.f32 0.0625, %v215_v21 }
 0x185   :  { %v1258_v23 = vsub.f32 %v204_v50, %v238_v22 }
 0x186   :  { %v221_v24 = vpop.xlane.xlu1 %220  ;;  %v218_v25 = vpop.xlane.xlu0 %217 }
 0x187   :  { %v240_v26 = vmul.f32 0.0625, %v221_v24  ;;  %v239_v27 = vmul.f32 0.0625, %v218_v25  ;;  %v254_v28 = vmul.f32 %v1258_v23, %v1258_v23  ;;  %v332_v24 = vsub.s32 2, %v1241_v15 }
 0x189   :  { %v1262_v29 = vsub.f32 %v206_v59, %v240_v26  ;;  %v1264_v30 = vsub.f32 %v205_v56, %v239_v27  ;;  %v262_v31 = vsel %vm212_vm1, %v254_v28, 0.0  ;;  %v321_v27 = vrot.slane %v1247_v17, %v320_v18 }
 0x18a   :  { %v224_v32 = vpop.xlane.xlu1 %223  ;;  %263 = vadd.xlane.f32.xlu0 %v262_v31  ;;  %v227_v33 = vpop.xlane.xlu0 %226 }
 0x18b   :  { %v241_v34 = vmul.f32 0.0625, %v224_v32  ;;  %v242_v35 = vmul.f32 0.0625, %v227_v33  ;;  %v256_v36 = vmul.f32 %v1262_v29, %v1262_v29  ;;  %v255_v37 = vmul.f32 %v1264_v30, %v1264_v30 }
 0x18d   :  { %v1271_v38 = vsub.f32 %v207_v62, %v241_v34  ;;  %v1273_v39 = vsub.f32 %v208_v5, %v242_v35  ;;  %v268_v40 = vsel %vm212_vm1, %v256_v36, 0.0  ;;  %v265_v41 = vsel %vm212_vm1, %v255_v37, 0.0  ;;  %v343_v62 = vld [vmem:[%s1481_s2 + $0x8] sm:$0xff] }
 0x18e   :  { %v230_v42 = vpop.xlane.xlu1 %229  ;;  %269 = vadd.xlane.f32.xlu0 %v268_v40  ;;  %266 = vadd.xlane.f32.xlu1 %v265_v41  ;;  %v233_v43 = vpop.xlane.xlu0 %232  ;;  %v1081_v63 = vpack.c.bf16 %v343_v62, %v342_v61  ;;  %v333_v35 = vrot.slane %v1247_v17, %v332_v24 }
 0x18f   :  { %v243_v44 = vmul.f32 0.0625, %v230_v42  ;;  %v244_v45 = vmul.f32 0.0625, %v233_v43  ;;  %v257_v46 = vmul.f32 %v1271_v38, %v1271_v38  ;;  %v258_v47 = vmul.f32 %v1273_v39, %v1273_v39 }
 0x190   :  { %1082 = vmatprep.subr.bf16.mxu1 %v1081_v63 }
 0x191   :  { %v1281_v48 = vsub.f32 %v209_v10, %v243_v44  ;;  %v1283_v49 = vsub.f32 %v210_v14, %v244_v45  ;;  %v271_v50 = vsel %vm212_vm1, %v257_v46, 0.0  ;;  %v274_v51 = vsel %vm212_vm1, %v258_v47, 0.0  ;;  %1084 = vmatpush3.bf16.msra.mxu1 %v1081_v63 }
 0x192   :  { %v236_v52 = vpop.xlane.xlu1 %235  ;;  %272 = vadd.xlane.f32.xlu1 %v271_v50  ;;  %275 = vadd.xlane.f32.xlu0 %v274_v51 }
 0x193   :  { %v245_v53 = vmul.f32 0.0625, %v236_v52  ;;  %v259_v54 = vmul.f32 %v1281_v48, %v1281_v48  ;;  %v260_v55 = vmul.f32 %v1283_v49, %v1283_v49  ;;  %1086 = vmatprep.subr.bf16.mxu1 %v1085_v2 }
 0x195   :  { %v1291_v56 = vsub.f32 %v211_v19, %v245_v53  ;;  %v277_v57 = vsel %vm212_vm1, %v259_v54, 0.0  ;;  %v280_v58 = vsel %vm212_vm1, %v260_v55, 0.0 }
 0x196   :  { %278 = vadd.xlane.f32.xlu1 %v277_v57  ;;  %281 = vadd.xlane.f32.xlu0 %v280_v58 }
 0x197   :  { %v261_v59 = vmul.f32 %v1291_v56, %v1291_v56 }
 0x199   :  { %v283_v60 = vsel %vm212_vm1, %v261_v59, 0.0 }
 0x19a   :  { %284 = vadd.xlane.f32.xlu1 %v283_v60 }
 0x217   :  { %v264_v3 = vpop.xlane.xlu0 %263 }
 0x218   :  { %v286_v4 = vmul.f32 0.0625, %v264_v3 }
 0x21a   :  { %v294_v5 = vadd.f32 1e-05, %v286_v4 }
 0x21b   :  { %v267_v6 = vpop.xlane.xlu1 %266  ;;  %v270_v7 = vpop.xlane.xlu0 %269 }
 0x21c   :  { %1109 = vrsqrt.f32 %v294_v5  ;;  %v287_v8 = vmul.f32 0.0625, %v267_v6  ;;  %v288_v9 = vmul.f32 0.0625, %v270_v7 }
 0x21e   :  { %v295_v10 = vadd.f32 1e-05, %v287_v8  ;;  %v296_v11 = vadd.f32 1e-05, %v288_v9  ;;  %v485_v9 = vsub.s32 3, %v1241_v15 }
 0x21f   :  { %v273_v12 = vpop.xlane.xlu1 %272  ;;  %v276_v13 = vpop.xlane.xlu0 %275 }
 0x220   :  { %1111 = vrsqrt.f32 %v295_v10  ;;  %v289_v14 = vmul.f32 0.0625, %v273_v12  ;;  %v290_v16 = vmul.f32 0.0625, %v276_v13  ;;  %v486_v10 = vrot.slane %v1247_v17, %v485_v9 }
 0x221   :  { %1113 = vrsqrt.f32 %v296_v11 }
 0x222   :  { %v297_v19 = vadd.f32 1e-05, %v289_v14  ;;  %v298_v20 = vadd.f32 1e-05, %v290_v16 }
 0x223   :  { %v279_v21 = vpop.xlane.xlu1 %278  ;;  %v282_v22 = vpop.xlane.xlu0 %281 }
 0x224   :  { %1115 = vrsqrt.f32 %v297_v19  ;;  %v291_v25 = vmul.f32 0.0625, %v279_v21  ;;  %v292_v26 = vmul.f32 0.0625, %v282_v22 }
 0x225   :  { %1117 = vrsqrt.f32 %v298_v20 }
 0x226   :  { %v1110_v28 = vpop.eup %1109  ;;  %v299_v31 = vadd.f32 1e-05, %v291_v25  ;;  %v300_v32 = vadd.f32 1e-05, %v292_v26 }
 0x227   :  { %v285_v33 = vpop.xlane.xlu1 %284  ;;  %v310_v34 = vmul.f32 %v1110_v28, %v1258_v23 }
 0x228   :  { %1119 = vrsqrt.f32 %v299_v31  ;;  %v293_v36 = vmul.f32 0.0625, %v285_v33 }
 0x229   :  { %1121 = vrsqrt.f32 %v300_v32  ;;  %v322_v37 = vmul.f32 %v321_v27, %v310_v34 }
 0x22a   :  { %v1112_v40 = vpop.eup %1111  ;;  %v301_v41 = vadd.f32 1e-05, %v293_v36 }
 0x22b   :  { %v1114_v42 = vpop.eup %1113  ;;  %v334_v43 = vadd.f32 %v333_v35, %v322_v37  ;;  %v311_v44 = vmul.f32 %v1112_v40, %v1264_v30 }
 0x22c   :  { %1123 = vrsqrt.f32 %v301_v41  ;;  %v312_v45 = vmul.f32 %v1114_v42, %v1262_v29 }
 0x22d   :  { %1029 = vmatprep.mubr.msk.f32.mxu1 %vm212_vm1, %v334_v43  ;;  %v323_v46 = vmul.f32 %v321_v27, %v311_v44 }
 0x22e   :  { %v1116_v47 = vpop.eup %1115  ;;  %v324_v23 = vmul.f32 %v321_v27, %v312_v45 }
 0x22f   :  { %v1118_v50 = vpop.eup %1117  ;;  %v335_v51 = vadd.f32 %v333_v35, %v323_v46  ;;  %v313_v52 = vmul.f32 %v1116_v47, %v1271_v38 }
 0x230   :  { %v336_v53 = vadd.f32 %v333_v35, %v324_v23  ;;  %v314_v54 = vmul.f32 %v1118_v50, %v1273_v39 }
 0x231   :  { %1030 = vmatmul.mubr.msk.f32.vlgmr.msra.gmra.mrb[0].mxu1 %vm212_vm1, %v335_v51  ;;  %v325_v55 = vmul.f32 %v321_v27, %v313_v52 }
 0x232   :  { %v1120_v57 = vpop.eup %1119  ;;  %1032 = vmatprep.mubr.msk.f32.mxu1 %vm212_vm1, %v336_v53  ;;  %v326_v30 = vmul.f32 %v321_v27, %v314_v54  ;;  %1088 = vmatpush3.bf16.msra.mxu1 %v1085_v2 }
 0x233   :  { %v1122_v29 = vpop.eup %1121  ;;  %v337_v58 = vadd.f32 %v333_v35, %v325_v55  ;;  %v315_v59 = vmul.f32 %v1120_v57, %v1281_v48 }
 0x234   :  { %v338_v60 = vadd.f32 %v333_v35, %v326_v30  ;;  %v316_v61 = vmul.f32 %v1122_v29, %v1283_v49 }
 0x235   :  { %1033 = vmatmul.mubr.msk.f32.gmra.mrb[2].mxu1 %vm212_vm1, %v337_v58  ;;  %v327_v38 = vmul.f32 %v321_v27, %v315_v59 }
 0x236   :  { %v1124_v62 = vpop.eup %1123  ;;  %1035 = vmatprep.mubr.msk.f32.mxu1 %vm212_vm1, %v338_v60  ;;  %v328_v39 = vmul.f32 %v321_v27, %v316_v61 }
 0x237   :  { %v339_v63 = vadd.f32 %v333_v35, %v327_v38  ;;  %v317_v0 = vmul.f32 %v1124_v62, %v1291_v56 }
 0x238   :  { %v340_v1 = vadd.f32 %v333_v35, %v328_v39 }
 0x239   :  { %1036 = vmatmul.mubr.msk.f32.gmra.mrb[4].mxu1 %vm212_vm1, %v339_v63  ;;  %v329_v2 = vmul.f32 %v321_v27, %v317_v0 }
 0x23a   :  { %1038 = vmatprep.mubr.msk.f32.mxu1 %vm212_vm1, %v340_v1 }
 0x23b   :  { %v341_v48 = vadd.f32 %v333_v35, %v329_v2 }
 0x23d   :  { %1039 = vmatmul.mubr.msk.f32.gmra.mrb[6].mxu1 %vm212_vm1, %v341_v48 }
 0x304   :  { %v1031_v49 = vpop.f32.mrb[0].mxu1 }
 0x305   :  { %474 = vst.msk [vmem:[%s1483_s6 + $0x8] sm:$0xff] %vm212_vm1, %v1031_v49  ;;  %v434_v3 = vpop.f32.mrb[1].mxu1 }
 0x306   :  { %473 = vst.msk [vmem:[%s1483_s6] sm:$0xff] %vm212_vm1, %v434_v3  ;;  %1045 = vmatprep.mubr.msk.f32.mxu1 %vm212_vm1, %v434_v3 }
 0x307   :  { %1046 = vmatmul.mubr.msk.f32.vlgmr.msra.gmra.mrb[8].mxu1 %vm212_vm1, %v1031_v49 }
 0x308   :  { %v1034_v56 = vpop.f32.mrb[2].mxu1 }
 0x309   :  { %476 = vst.msk [vmem:[%s1483_s6 + $0x18] sm:$0xff] %vm212_vm1, %v1034_v56  ;;  %v444_v4 = vpop.f32.mrb[3].mxu1 }
 0x30a   :  { %475 = vst.msk [vmem:[%s1483_s6 + $0x10] sm:$0xff] %vm212_vm1, %v444_v4  ;;  %1048 = vmatprep.mubr.msk.f32.mxu1 %vm212_vm1, %v444_v4 }
 0x30b   :  { %1049 = vmatmul.mubr.msk.f32.gmra.mrb[10].mxu1 %vm212_vm1, %v1034_v56 }
 0x30c   :  { %v1037_v5 = vpop.f32.mrb[4].mxu1 }
 0x30d   :  { %478 = vst.msk [vmem:[%s1483_s6 + $0x28] sm:$0xff] %vm212_vm1, %v1037_v5  ;;  %v454_v6 = vpop.f32.mrb[5].mxu1 }
 0x30e   :  { %477 = vst.msk [vmem:[%s1483_s6 + $0x20] sm:$0xff] %vm212_vm1, %v454_v6  ;;  %1051 = vmatprep.mubr.msk.f32.mxu1 %vm212_vm1, %v454_v6 }
 0x30f   :  { %1052 = vmatmul.mubr.msk.f32.gmra.mrb[12].mxu1 %vm212_vm1, %v1037_v5 }
 0x310   :  { %v1040_v7 = vpop.f32.mrb[6].mxu1 }
 0x311   :  { %480 = vst.msk [vmem:[%s1483_s6 + $0x38] sm:$0xff] %vm212_vm1, %v1040_v7  ;;  %v464_v8 = vpop.f32.mrb[7].mxu1 }
 0x312   :  { %479 = vst.msk [vmem:[%s1483_s6 + $0x30] sm:$0xff] %vm212_vm1, %v464_v8  ;;  %1054 = vmatprep.mubr.msk.f32.mxu1 %vm212_vm1, %v464_v8 }
 0x313   :  { %1055 = vmatmul.mubr.msk.f32.gmra.mrb[14].mxu1 %vm212_vm1, %v1040_v7 }
 0x3da   :  { %v1047_v11 = vpop.f32.mrb[8].mxu1 }
 0x3db   :  { %v583_v12 = vadd.f32 %v1047_v11, %v486_v10  ;;  %v577_v13 = vpop.f32.mrb[9].mxu1 }
 0x3dc   :  { %v578_v14 = vadd.f32 %v577_v13, %v486_v10 }
 0x3dd   :  { %v625_v16 = vmul.f32 0.70710677, %v583_v12  ;;  %v617_v43 = vmul.f32 0.5, %v583_v12 }
 0x3de   :  { %v624_v18 = vmul.f32 0.70710677, %v578_v14  ;;  %v1050_v19 = vpop.f32.mrb[10].mxu1  ;;  %v616_v46 = vmul.f32 0.5, %v578_v14 }
 0x3df   :  { %1125 = verf.f32 %v625_v16  ;;  %v593_v20 = vadd.f32 %v1050_v19, %v486_v10  ;;  %v587_v21 = vpop.f32.mrb[11].mxu1 }
 0x3e0   :  { %1127 = verf.f32 %v624_v18  ;;  %v588_v22 = vadd.f32 %v587_v21, %v486_v10 }
 0x3e1   :  { %v627_v24 = vmul.f32 0.70710677, %v593_v20  ;;  %v619_v53 = vmul.f32 0.5, %v593_v20 }
 0x3e2   :  { %v626_v25 = vmul.f32 0.70710677, %v588_v22  ;;  %v1053_v26 = vpop.f32.mrb[12].mxu1  ;;  %v618_v57 = vmul.f32 0.5, %v588_v22 }
 0x3e3   :  { %1129 = verf.f32 %v627_v24  ;;  %v603_v27 = vadd.f32 %v1053_v26, %v486_v10  ;;  %v597_v28 = vpop.f32.mrb[13].mxu1 }
 0x3e4   :  { %1131 = verf.f32 %v626_v25  ;;  %v598_v31 = vadd.f32 %v597_v28, %v486_v10 }
 0x3e5   :  { %v629_v32 = vmul.f32 0.70710677, %v603_v27  ;;  %v621_v38 = vmul.f32 0.5, %v603_v27 }
 0x3e6   :  { %v628_v33 = vmul.f32 0.70710677, %v598_v31  ;;  %v1056_v34 = vpop.f32.mrb[14].mxu1  ;;  %v620_v63 = vmul.f32 0.5, %v598_v31 }
 0x3e7   :  { %1133 = verf.f32 %v629_v32  ;;  %v613_v35 = vadd.f32 %v1056_v34, %v486_v10  ;;  %v607_v36 = vpop.f32.mrb[15].mxu1 }
 0x3e8   :  { %1135 = verf.f32 %v628_v33  ;;  %v608_v37 = vadd.f32 %v607_v36, %v486_v10 }
 0x3e9   :  { %v1126_v40 = vpop.eup %1125  ;;  %v631_v41 = vmul.f32 0.70710677, %v613_v35  ;;  %v623_v56 = vmul.f32 0.5, %v613_v35 }
 0x3ea   :  { %v1128_v42 = vpop.eup %1127  ;;  %v630_v44 = vmul.f32 0.70710677, %v608_v37  ;;  %v641_v45 = vadd.f32 1.0, %v1126_v40  ;;  %v622_v6 = vmul.f32 0.5, %v608_v37 }
 0x3eb   :  { %1137 = verf.f32 %v631_v41  ;;  %v640_v47 = vadd.f32 1.0, %v1128_v42 }
 0x3ec   :  { %1139 = verf.f32 %v630_v44  ;;  %v649_v23 = vmul.f32 %v641_v45, %v617_v43 }
 0x3ed   :  { %v1130_v50 = vpop.eup %1129  ;;  %v648_v51 = vmul.f32 %v640_v47, %v616_v46 }
 0x3ee   :  { %v1132_v52 = vpop.eup %1131  ;;  %v659_v54 = vsel %vm212_vm1, %v649_v23, 0.0  ;;  %v643_v55 = vadd.f32 1.0, %v1130_v50 }
 0x3ef   :  { %660 = vadd.xlane.f32.xlu1 %v659_v54  ;;  %v656_v30 = vsel %vm212_vm1, %v648_v51, 0.0  ;;  %v642_v29 = vadd.f32 1.0, %v1132_v52 }
 0x3f0   :  { %657 = vadd.xlane.f32.xlu0 %v656_v30  ;;  %v651_v58 = vmul.f32 %v643_v55, %v619_v53 }
 0x3f1   :  { %v1134_v59 = vpop.eup %1133  ;;  %v650_v60 = vmul.f32 %v642_v29, %v618_v57 }
 0x3f2   :  { %v1136_v61 = vpop.eup %1135  ;;  %v665_v62 = vsel %vm212_vm1, %v651_v58, 0.0  ;;  %v645_v39 = vadd.f32 1.0, %v1134_v59 }
 0x3f3   :  { %666 = vadd.xlane.f32.xlu1 %v665_v62  ;;  %v662_v0 = vsel %vm212_vm1, %v650_v60, 0.0  ;;  %v644_v1 = vadd.f32 1.0, %v1136_v61  ;;  %v785_v61 = vld [vmem:[%s1484_s4 + $0x8] sm:$0xff] }
 0x3f4   :  { %663 = vadd.xlane.f32.xlu0 %v662_v0  ;;  %v653_v2 = vmul.f32 %v645_v39, %v621_v38 }
 0x3f5   :  { %v1138_v48 = vpop.eup %1137  ;;  %v652_v49 = vmul.f32 %v644_v1, %v620_v63 }
 0x3f6   :  { %v1140_v3 = vpop.eup %1139  ;;  %v671_v4 = vsel %vm212_vm1, %v653_v2, 0.0  ;;  %v647_v5 = vadd.f32 1.0, %v1138_v48 }
 0x3f7   :  { %672 = vadd.xlane.f32.xlu1 %v671_v4  ;;  %v668_v7 = vsel %vm212_vm1, %v652_v49, 0.0  ;;  %v646_v8 = vadd.f32 1.0, %v1140_v3 }
 0x3f8   :  { %669 = vadd.xlane.f32.xlu0 %v668_v7  ;;  %v655_v9 = vmul.f32 %v647_v5, %v623_v56 }
 0x3f9   :  { %v654_v10 = vmul.f32 %v646_v8, %v622_v6 }
 0x3fa   :  { %v677_v11 = vsel %vm212_vm1, %v655_v9, 0.0 }
 0x3fb   :  { %678 = vadd.xlane.f32.xlu1 %v677_v11  ;;  %v674_v12 = vsel %vm212_vm1, %v654_v10, 0.0 }
 0x3fc   :  { %675 = vadd.xlane.f32.xlu0 %v674_v12 }
 0x47c   :  { %v661_v13 = vpop.xlane.xlu1 %660 }
 0x47d   :  { %v681_v14 = vmul.f32 0.0625, %v661_v13  ;;  %v658_v16 = vpop.xlane.xlu0 %657 }
 0x47e   :  { %v680_v18 = vmul.f32 0.0625, %v658_v16 }
 0x47f   :  { %v1380_v19 = vsub.f32 %v649_v23, %v681_v14  ;;  %v774_v14 = vsub.s32 5, %v1241_v15 }
 0x480   :  { %v1382_v20 = vsub.f32 %v648_v51, %v680_v18  ;;  %v667_v21 = vpop.xlane.xlu1 %666 }
 0x481   :  { %v683_v22 = vmul.f32 0.0625, %v667_v21  ;;  %v664_v24 = vpop.xlane.xlu0 %663  ;;  %v697_v25 = vmul.f32 %v1380_v19, %v1380_v19 }
 0x482   :  { %v682_v26 = vmul.f32 0.0625, %v664_v24  ;;  %v696_v27 = vmul.f32 %v1382_v20, %v1382_v20 }
 0x483   :  { %v1388_v28 = vsub.f32 %v651_v58, %v683_v22  ;;  %v707_v31 = vsel %vm212_vm1, %v697_v25, 0.0 }
 0x484   :  { %v1391_v32 = vsub.f32 %v650_v60, %v682_v26  ;;  %v673_v33 = vpop.xlane.xlu1 %672  ;;  %708 = vadd.xlane.f32.xlu1 %v707_v31  ;;  %v704_v34 = vsel %vm212_vm1, %v696_v27, 0.0  ;;  %v784_v60 = vld [vmem:[%s1484_s4] sm:$0xff] }
 0x485   :  { %v685_v35 = vmul.f32 0.0625, %v673_v33  ;;  %705 = vadd.xlane.f32.xlu0 %v704_v34  ;;  %v670_v36 = vpop.xlane.xlu0 %669  ;;  %v699_v37 = vmul.f32 %v1388_v28, %v1388_v28  ;;  %v1089_v38 = vpack.c.bf16 %v785_v61, %v784_v60  ;;  %v775_v33 = vrot.slane %v1247_v17, %v774_v14 }
 0x486   :  { %v684_v40 = vmul.f32 0.0625, %v670_v36  ;;  %v698_v41 = vmul.f32 %v1391_v32, %v1391_v32 }
 0x487   :  { %v1398_v42 = vsub.f32 %v653_v2, %v685_v35  ;;  %v713_v43 = vsel %vm212_vm1, %v699_v37, 0.0  ;;  %1090 = vmatprep.subr.bf16.mxu0 %v1089_v38 }
 0x488   :  { %v1401_v44 = vsub.f32 %v652_v49, %v684_v40  ;;  %714 = vadd.xlane.f32.xlu1 %v713_v43  ;;  %v679_v45 = vpop.xlane.xlu1 %678  ;;  %v710_v46 = vsel %vm212_vm1, %v698_v41, 0.0  ;;  %1092 = vmatpush3.bf16.msra.mxu0 %v1089_v38 }
 0x489   :  { %v687_v47 = vmul.f32 0.0625, %v679_v45  ;;  %711 = vadd.xlane.f32.xlu0 %v710_v46  ;;  %v676_v23 = vpop.xlane.xlu0 %675  ;;  %v701_v50 = vmul.f32 %v1398_v42, %v1398_v42 }
 0x48a   :  { %v686_v51 = vmul.f32 0.0625, %v676_v23  ;;  %v700_v52 = vmul.f32 %v1401_v44, %v1401_v44 }
 0x48b   :  { %v1408_v53 = vsub.f32 %v655_v9, %v687_v47  ;;  %v719_v54 = vsel %vm212_vm1, %v701_v50, 0.0  ;;  %v762_v9 = vsub.s32 4, %v1241_v15 }
 0x48c   :  { %v1411_v55 = vsub.f32 %v654_v10, %v686_v51  ;;  %720 = vadd.xlane.f32.xlu1 %v719_v54  ;;  %v716_v57 = vsel %vm212_vm1, %v700_v52, 0.0 }
 0x48d   :  { %717 = vadd.xlane.f32.xlu0 %v716_v57  ;;  %v703_v30 = vmul.f32 %v1408_v53, %v1408_v53  ;;  %v763_v21 = vrot.slane %v1247_v17, %v762_v9 }
 0x48e   :  { %v702_v29 = vmul.f32 %v1411_v55, %v1411_v55 }
 0x48f   :  { %v725_v58 = vsel %vm212_vm1, %v703_v30, 0.0 }
 0x490   :  { %726 = vadd.xlane.f32.xlu1 %v725_v58  ;;  %v722_v59 = vsel %vm212_vm1, %v702_v29, 0.0 }
 0x491   :  { %723 = vadd.xlane.f32.xlu0 %v722_v59 }
 0x511   :  { %v709_v62 = vpop.xlane.xlu1 %708 }
 0x512   :  { %v729_v39 = vmul.f32 0.0625, %v709_v62  ;;  %v706_v63 = vpop.xlane.xlu0 %705 }
 0x513   :  { %v728_v0 = vmul.f32 0.0625, %v706_v63 }
 0x514   :  { %v737_v1 = vadd.f32 1e-05, %v729_v39 }
 0x515   :  { %v736_v2 = vadd.f32 1e-05, %v728_v0  ;;  %v715_v48 = vpop.xlane.xlu1 %714 }
 0x516   :  { %1141 = vrsqrt.f32 %v737_v1  ;;  %v731_v49 = vmul.f32 0.0625, %v715_v48  ;;  %v712_v3 = vpop.xlane.xlu0 %711 }
 0x517   :  { %1143 = vrsqrt.f32 %v736_v2  ;;  %v730_v56 = vmul.f32 0.0625, %v712_v3 }
 0x518   :  { %v739_v4 = vadd.f32 1e-05, %v731_v49 }
 0x519   :  { %v738_v5 = vadd.f32 1e-05, %v730_v56  ;;  %v721_v6 = vpop.xlane.xlu1 %720 }
 0x51a   :  { %1145 = vrsqrt.f32 %v739_v4  ;;  %v733_v7 = vmul.f32 0.0625, %v721_v6  ;;  %v718_v8 = vpop.xlane.xlu0 %717 }
 0x51b   :  { %1147 = vrsqrt.f32 %v738_v5  ;;  %v732_v10 = vmul.f32 0.0625, %v718_v8 }
 0x51c   :  { %v741_v11 = vadd.f32 1e-05, %v733_v7 }
 0x51d   :  { %v740_v12 = vadd.f32 1e-05, %v732_v10  ;;  %v727_v13 = vpop.xlane.xlu1 %726 }
 0x51e   :  { %1149 = vrsqrt.f32 %v741_v11  ;;  %v735_v16 = vmul.f32 0.0625, %v727_v13  ;;  %v724_v18 = vpop.xlane.xlu0 %723 }
 0x51f   :  { %1151 = vrsqrt.f32 %v740_v12  ;;  %v734_v22 = vmul.f32 0.0625, %v724_v18 }
 0x520   :  { %v1142_v24 = vpop.eup %1141  ;;  %v743_v25 = vadd.f32 1e-05, %v735_v16 }
 0x521   :  { %v1144_v26 = vpop.eup %1143  ;;  %v753_v27 = vmul.f32 %v1142_v24, %v1380_v19  ;;  %v742_v31 = vadd.f32 1e-05, %v734_v22 }
 0x522   :  { %1153 = vrsqrt.f32 %v743_v25  ;;  %v752_v34 = vmul.f32 %v1144_v26, %v1382_v20 }
 0x523   :  { %v765_v35 = vmul.f32 %v763_v21, %v753_v27  ;;  %1155 = vrsqrt.f32 %v742_v31 }
 0x524   :  { %v1146_v15 = vpop.eup %1145  ;;  %v764_v36 = vmul.f32 %v763_v21, %v752_v34 }
 0x525   :  { %v1148_v37 = vpop.eup %1147  ;;  %v755_v40 = vmul.f32 %v1146_v15, %v1388_v28  ;;  %v777_v45 = vadd.f32 %v775_v33, %v765_v35 }
 0x526   :  { %v776_v41 = vadd.f32 %v775_v33, %v764_v36  ;;  %v754_v43 = vmul.f32 %v1148_v37, %v1391_v32 }
 0x527   :  { %v767_v46 = vmul.f32 %v763_v21, %v755_v40 }
 0x528   :  { %v1150_v47 = vpop.eup %1149  ;;  %1061 = vmatprep.mubr.msk.f32.mxu0 %vm212_vm1, %v776_v41  ;;  %v766_v19 = vmul.f32 %v763_v21, %v754_v43 }
 0x529   :  { %v1152_v17 = vpop.eup %1151  ;;  %1062 = vmatmul.mubr.msk.f32.vlgmr.msra.gmra.mrb[8].mxu0 %vm212_vm1, %v777_v45  ;;  %v757_v20 = vmul.f32 %v1150_v47, %v1398_v42  ;;  %v779_v51 = vadd.f32 %v775_v33, %v767_v46 }
 0x52a   :  { %v778_v23 = vadd.f32 %v775_v33, %v766_v19  ;;  %v756_v50 = vmul.f32 %v1152_v17, %v1401_v44 }
 0x52b   :  { %v769_v52 = vmul.f32 %v763_v21, %v757_v20 }
 0x52c   :  { %v1154_v28 = vpop.eup %1153  ;;  %1064 = vmatprep.mubr.msk.f32.mxu0 %vm212_vm1, %v778_v23  ;;  %v768_v32 = vmul.f32 %v763_v21, %v756_v50 }
 0x52d   :  { %v1156_v54 = vpop.eup %1155  ;;  %1065 = vmatmul.mubr.msk.f32.gmra.mrb[10].mxu0 %vm212_vm1, %v779_v51  ;;  %v759_v57 = vmul.f32 %v1154_v28, %v1408_v53  ;;  %v781_v58 = vadd.f32 %v775_v33, %v769_v52 }
 0x52e   :  { %v780_v30 = vadd.f32 %v775_v33, %v768_v32  ;;  %v758_v29 = vmul.f32 %v1156_v54, %v1411_v55 }
 0x52f   :  { %v771_v59 = vmul.f32 %v763_v21, %v759_v57 }
 0x530   :  { %1067 = vmatprep.mubr.msk.f32.mxu0 %vm212_vm1, %v780_v30  ;;  %v770_v42 = vmul.f32 %v763_v21, %v758_v29 }
 0x531   :  { %1068 = vmatmul.mubr.msk.f32.gmra.mrb[12].mxu0 %vm212_vm1, %v781_v58  ;;  %v783_v60 = vadd.f32 %v775_v33, %v771_v59 }
 0x532   :  { %v782_v44 = vadd.f32 %v775_v33, %v770_v42 }
 0x534   :  { %1070 = vmatprep.mubr.msk.f32.mxu0 %vm212_vm1, %v782_v44 }
 0x535   :  { %1071 = vmatmul.mubr.msk.f32.gmra.mrb[14].mxu0 %vm212_vm1, %v783_v60 }
 0x5fc   :  { %v1063_v61 = vpop.f32.mrb[8].mxu0 }
 0x5fd   :  { %916 = vst.msk [vmem:[%s1485_s7 + $0x8] sm:$0xff] %vm42_vm0, %v1063_v61  ;;  %v876_v53 = vpop.f32.mrb[9].mxu0 }
 0x5fe   :  { %915 = vst.msk [vmem:[%s1485_s7] sm:$0xff] %vm42_vm0, %v876_v53 }
 0x600   :  { %v1066_v55 = vpop.f32.mrb[10].mxu0 }
 0x601   :  { %918 = vst.msk [vmem:[%s1485_s7 + $0x18] sm:$0xff] %vm42_vm0, %v1066_v55  ;;  %v886_v38 = vpop.f32.mrb[11].mxu0 }
 0x602   :  { %917 = vst.msk [vmem:[%s1485_s7 + $0x10] sm:$0xff] %vm42_vm0, %v886_v38 }
 0x604   :  { %v1069_v62 = vpop.f32.mrb[12].mxu0 }
 0x605   :  { %920 = vst.msk [vmem:[%s1485_s7 + $0x28] sm:$0xff] %vm42_vm0, %v1069_v62  ;;  %v896_v39 = vpop.f32.mrb[13].mxu0 }
 0x606   :  { %919 = vst.msk [vmem:[%s1485_s7 + $0x20] sm:$0xff] %vm42_vm0, %v896_v39 }
 0x608   :  { %v1072_v63 = vpop.f32.mrb[14].mxu0 }
 0x609   :  { %922 = vst.msk [vmem:[%s1485_s7 + $0x38] sm:$0xff] %vm42_vm0, %v1072_v63  ;;  %v906_v0 = vpop.f32.mrb[15].mxu0 }
 0x60a   :  { %921 = vst.msk [vmem:[%s1485_s7 + $0x30] sm:$0xff] %vm42_vm0, %v906_v0 }

// kernel: tpu_custom_call.1
= control target key start
LH: loop header
LB: loop body
LE: loop exit
PB: predicated region body
PF: predicated region fallthrough
CT: control target
= control target key end

     0   :  { %vm42_vm0 = vcmask 261120   ;;  %v38_v14 = vlaneseq  ;;  %vm212_vm1 = vcmask 130048   ;;  %s1478_s1 = inlined_call_operand.vmem [shape: f32[32,16], index: 1, kind: input, shape index: {}]   ;;  %s1479_s0 = inlined_call_operand.vmem [shape: f32[64,32], index: 0, kind: input, shape index: {}]   ;;  %s1480_s5 = inlined_call_operand.vmem [shape: f32[6,16], index: 5, kind: input, shape index: {}]   ;;  %s1481_s2 = inlined_call_operand.vmem [shape: f32[16,16], index: 2, kind: input, shape index: {}]   ;;  %s1482_s3 = inlined_call_operand.vmem [shape: f32[16,16], index: 3, kind: input, shape index: {}]   ;;  %s1483_s6 = inlined_call_operand.vmem [shape: f32[64,16], index: 6, kind: output, shape index: {0}]   ;;  %s1484_s4 = inlined_call_operand.vmem [shape: f32[16,32], index: 4, kind: input, shape index: {}]   ;;  %s1485_s7 = inlined_call_operand.vmem [shape: f32[64,32], index: 7, kind: output, shape index: {1}]  }
   0x1   :  { %v34_v0 = vld [vmem:[%s1478_s1] sm:$0xff]  ;;  %v35_v1 = vld [vmem:[%s1478_s1 + $0x8] sm:$0xff]  ;;  %v36_v2 = vld [vmem:[%s1478_s1 + $0x10] sm:$0xff] }
   0x2   :  { %v1073_v3 = vpack.c.bf16 %v35_v1, %v34_v0  ;;  %v37_v4 = vld [vmem:[%s1478_s1 + $0x18] sm:$0xff]  ;;  %v25_v5 = vld [vmem:[%s1479_s0] sm:$0xff]  ;;  %v26_v7 = vld [vmem:[%s1479_s0 + $0x8] sm:$0xff]  ;;  %v1241_v15 = vshrl.u32 %v38_v14, 7 }
   0x3   :  { %v1077_v6 = vpack.c.bf16 %v37_v4, %v36_v2  ;;  %1013 = vmatprep.mubr.msk.f32.mxu0 %vm42_vm0, %v25_v5  ;;  %v27_v8 = vld [vmem:[%s1479_s0 + $0x10] sm:$0xff]  ;;  %v28_v9 = vld [vmem:[%s1479_s0 + $0x18] sm:$0xff]  ;;  %v29_v10 = vld [vmem:[%s1479_s0 + $0x20] sm:$0xff] }
   0x4   :  { %1074 = vmatprep.subr.bf16.mxu0 %v1073_v3  ;;  %v30_v11 = vld [vmem:[%s1479_s0 + $0x28] sm:$0xff]  ;;  %v31_v12 = vld [vmem:[%s1479_s0 + $0x30] sm:$0xff]  ;;  %v32_v13 = vld [vmem:[%s1479_s0 + $0x38] sm:$0xff]  ;;  %v40_v16 = vsub.s32 0, %v1241_v15 }
   0x5   :  { %1076 = vmatpush3.bf16.msra.mxu0 %v1073_v3  ;;  %v1247_v17 = vld [vmem:[%s1480_s5] sm:$0x3f] }
   0x6   :  { %1078 = vmatprep.subr.bf16.mxu0 %v1077_v6  ;;  %v41_v18 = vrot.slane %v1247_v17, %v40_v16 }
   0x9   :  { %1080 = vmatpush3.bf16.msra.mxu0 %v1077_v6 }
   0xc   :  { %1014 = vmatmul.mubr.msk.f32.vlgmr.msra.gmra.mrb[0].mxu0 %vm42_vm0, %v26_v7 }
   0xd   :  { %1016 = vmatprep.mubr.msk.f32.mxu0 %vm42_vm0, %v27_v8 }
  0x10   :  { %1017 = vmatmul.mubr.msk.f32.gmra.mrb[2].mxu0 %vm42_vm0, %v28_v9 }
  0x11   :  { %1019 = vmatprep.mubr.msk.f32.mxu0 %vm42_vm0, %v29_v10 }
  0x14   :  { %1020 = vmatmul.mubr.msk.f32.gmra.mrb[4].mxu0 %vm42_vm0, %v30_v11 }
  0x15   :  { %1022 = vmatprep.mubr.msk.f32.mxu0 %vm42_vm0, %v31_v12 }
  0x18   :  { %1023 = vmatmul.mubr.msk.f32.gmra.mrb[6].mxu0 %vm42_vm0, %v32_v13 }
  0xdf   :  { %v1015_v19 = vpop.f32.mrb[0].mxu0 }
  0xe0   :  { %v139_v20 = vadd.f32 %v1015_v19, %v41_v18  ;;  %v133_v21 = vpop.f32.mrb[1].mxu0 }
  0xe1   :  { %v134_v22 = vadd.f32 %v133_v21, %v41_v18 }
  0xe2   :  { %v181_v23 = vmul.f32 0.70710677, %v139_v20  ;;  %v173_v49 = vmul.f32 0.5, %v139_v20 }
  0xe3   :  { %v180_v24 = vmul.f32 0.70710677, %v134_v22  ;;  %v1018_v25 = vpop.f32.mrb[2].mxu0  ;;  %v172_v45 = vmul.f32 0.5, %v134_v22 }
  0xe4   :  { %1093 = verf.f32 %v181_v23  ;;  %v149_v26 = vadd.f32 %v1018_v25, %v41_v18  ;;  %v143_v27 = vpop.f32.mrb[3].mxu0 }
  0xe5   :  { %1095 = verf.f32 %v180_v24  ;;  %v144_v28 = vadd.f32 %v143_v27, %v41_v18 }
  0xe6   :  { %v183_v29 = vmul.f32 0.70710677, %v149_v26  ;;  %v175_v57 = vmul.f32 0.5, %v149_v26 }
  0xe7   :  { %v182_v30 = vmul.f32 0.70710677, %v144_v28  ;;  %v1021_v31 = vpop.f32.mrb[4].mxu0  ;;  %v174_v53 = vmul.f32 0.5, %v144_v28 }
  0xe8   :  { %1097 = verf.f32 %v183_v29  ;;  %v159_v32 = vadd.f32 %v1021_v31, %v41_v18  ;;  %v153_v33 = vpop.f32.mrb[5].mxu0 }
  0xe9   :  { %1099 = verf.f32 %v182_v30  ;;  %v154_v34 = vadd.f32 %v153_v33, %v41_v18 }
  0xea   :  { %v185_v35 = vmul.f32 0.70710677, %v159_v32  ;;  %v177_v4 = vmul.f32 0.5, %v159_v32 }
  0xeb   :  { %v184_v36 = vmul.f32 0.70710677, %v154_v34  ;;  %v1024_v37 = vpop.f32.mrb[6].mxu0  ;;  %v176_v61 = vmul.f32 0.5, %v154_v34 }
  0xec   :  { %1101 = verf.f32 %v185_v35  ;;  %v169_v38 = vadd.f32 %v1024_v37, %v41_v18  ;;  %v163_v39 = vpop.f32.mrb[7].mxu0 }
  0xed   :  { %1103 = verf.f32 %v184_v36  ;;  %v164_v40 = vadd.f32 %v163_v39, %v41_v18 }
  0xee   :  { %v1094_v41 = vpop.eup %1093  ;;  %v187_v42 = vmul.f32 0.70710677, %v169_v38  ;;  %v179_v13 = vmul.f32 0.5, %v169_v38 }
  0xef   :  { %v1096_v43 = vpop.eup %1095  ;;  %v186_v44 = vmul.f32 0.70710677, %v164_v40  ;;  %v197_v47 = vadd.f32 1.0, %v1094_v41  ;;  %v178_v7 = vmul.f32 0.5, %v164_v40 }
  0xf0   :  { %1105 = verf.f32 %v187_v42  ;;  %v196_v46 = vadd.f32 1.0, %v1096_v43 }
  0xf1   :  { %1107 = verf.f32 %v186_v44  ;;  %v205_v56 = vmul.f32 %v197_v47, %v173_v49 }
  0xf2   :  { %v1098_v48 = vpop.eup %1097  ;;  %v204_v50 = vmul.f32 %v196_v46, %v172_v45 }
  0xf3   :  { %v1100_v51 = vpop.eup %1099  ;;  %v199_v52 = vadd.f32 1.0, %v1098_v48  ;;  %v216_v0 = vsel %vm212_vm1, %v205_v56, 0.0 }
  0xf4   :  { %v213_v54 = vsel %vm212_vm1, %v204_v50, 0.0  ;;  %v198_v55 = vadd.f32 1.0, %v1100_v51 }
  0xf5   :  { %214 = vadd.xlane.f32.xlu0 %v213_v54  ;;  %v207_v62 = vmul.f32 %v199_v52, %v175_v57 }
  0xf6   :  { %v1102_v58 = vpop.eup %1101  ;;  %v206_v59 = vmul.f32 %v198_v55, %v174_v53 }
  0xf7   :  { %v1104_v60 = vpop.eup %1103  ;;  %v201_v2 = vadd.f32 1.0, %v1102_v58  ;;  %v222_v8 = vsel %vm212_vm1, %v207_v62, 0.0 }
  0xf8   :  { %v219_v63 = vsel %vm212_vm1, %v206_v59, 0.0  ;;  %v200_v1 = vadd.f32 1.0, %v1104_v60 }
  0xf9   :  { %220 = vadd.xlane.f32.xlu1 %v219_v63  ;;  %217 = vadd.xlane.f32.xlu0 %v216_v0  ;;  %v209_v10 = vmul.f32 %v201_v2, %v177_v4  ;;  %v481_v0 = vld [vmem:[%s1482_s3] sm:$0xff] }
  0xfa   :  { %v1106_v3 = vpop.eup %1105  ;;  %v208_v5 = vmul.f32 %v200_v1, %v176_v61  ;;  %v342_v61 = vld [vmem:[%s1481_s2] sm:$0xff]  ;;  %v482_v1 = vld [vmem:[%s1482_s3 + $0x8] sm:$0xff] }
  0xfb   :  { %v1108_v6 = vpop.eup %1107  ;;  %v203_v12 = vadd.f32 1.0, %v1106_v3  ;;  %v228_v16 = vsel %vm212_vm1, %v209_v10, 0.0  ;;  %v1085_v2 = vpack.c.bf16 %v482_v1, %v481_v0 }
  0xfc   :  { %v225_v9 = vsel %vm212_vm1, %v208_v5, 0.0  ;;  %v202_v11 = vadd.f32 1.0, %v1108_v6 }
  0xfd   :  { %223 = vadd.xlane.f32.xlu1 %v222_v8  ;;  %226 = vadd.xlane.f32.xlu0 %v225_v9  ;;  %v211_v19 = vmul.f32 %v203_v12, %v179_v13 }
  0xfe   :  { %v210_v14 = vmul.f32 %v202_v11, %v178_v7 }
  0xff   :  { %v234_v20 = vsel %vm212_vm1, %v211_v19, 0.0 }
 0x100   :  { %v231_v18 = vsel %vm212_vm1, %v210_v14, 0.0 }
 0x101   :  { %229 = vadd.xlane.f32.xlu1 %v228_v16  ;;  %232 = vadd.xlane.f32.xlu0 %v231_v18  ;;  %v320_v18 = vsub.s32 1, %v1241_v15 }
 0x105   :  { %235 = vadd.xlane.f32.xlu1 %v234_v20 }
 0x182   :  { %v215_v21 = vpop.xlane.xlu0 %214 }
 0x183   :  { %v238_v22 = vmul.f32 0.0625, %v215_v21 }
 0x185   :  { %v1258_v23 = vsub.f32 %v204_v50, %v238_v22 }
 0x186   :  { %v221_v24 = vpop.xlane.xlu1 %220  ;;  %v218_v25 = vpop.xlane.xlu0 %217 }
 0x187   :  { %v240_v26 = vmul.f32 0.0625, %v221_v24  ;;  %v239_v27 = vmul.f32 0.0625, %v218_v25  ;;  %v254_v28 = vmul.f32 %v1258_v23, %v1258_v23  ;;  %v332_v24 = vsub.s32 2, %v1241_v15 }
 0x189   :  { %v1262_v29 = vsub.f32 %v206_v59, %v240_v26  ;;  %v1264_v30 = vsub.f32 %v205_v56, %v239_v27  ;;  %v262_v31 = vsel %vm212_vm1, %v254_v28, 0.0  ;;  %v321_v27 = vrot.slane %v1247_v17, %v320_v18 }
 0x18a   :  { %v224_v32 = vpop.xlane.xlu1 %223  ;;  %263 = vadd.xlane.f32.xlu0 %v262_v31  ;;  %v227_v33 = vpop.xlane.xlu0 %226 }
 0x18b   :  { %v241_v34 = vmul.f32 0.0625, %v224_v32  ;;  %v242_v35 = vmul.f32 0.0625, %v227_v33  ;;  %v256_v36 = vmul.f32 %v1262_v29, %v1262_v29  ;;  %v255_v37 = vmul.f32 %v1264_v30, %v1264_v30 }
 0x18d   :  { %v1271_v38 = vsub.f32 %v207_v62, %v241_v34  ;;  %v1273_v39 = vsub.f32 %v208_v5, %v242_v35  ;;  %v268_v40 = vsel %vm212_vm1, %v256_v36, 0.0  ;;  %v265_v41 = vsel %vm212_vm1, %v255_v37, 0.0  ;;  %v343_v62 = vld [vmem:[%s1481_s2 + $0x8] sm:$0xff] }
 0x18e   :  { %v230_v42 = vpop.xlane.xlu1 %229  ;;  %269 = vadd.xlane.f32.xlu0 %v268_v40  ;;  %266 = vadd.xlane.f32.xlu1 %v265_v41  ;;  %v233_v43 = vpop.xlane.xlu0 %232  ;;  %v1081_v63 = vpack.c.bf16 %v343_v62, %v342_v61  ;;  %v333_v35 = vrot.slane %v1247_v17, %v332_v24 }
 0x18f   :  { %v243_v44 = vmul.f32 0.0625, %v230_v42  ;;  %v244_v45 = vmul.f32 0.0625, %v233_v43  ;;  %v257_v46 = vmul.f32 %v1271_v38, %v1271_v38  ;;  %v258_v47 = vmul.f32 %v1273_v39, %v1273_v39 }
 0x190   :  { %1082 = vmatprep.subr.bf16.mxu1 %v1081_v63 }
 0x191   :  { %v1281_v48 = vsub.f32 %v209_v10, %v243_v44  ;;  %v1283_v49 = vsub.f32 %v210_v14, %v244_v45  ;;  %v271_v50 = vsel %vm212_vm1, %v257_v46, 0.0  ;;  %v274_v51 = vsel %vm212_vm1, %v258_v47, 0.0  ;;  %1084 = vmatpush3.bf16.msra.mxu1 %v1081_v63 }
 0x192   :  { %v236_v52 = vpop.xlane.xlu1 %235  ;;  %272 = vadd.xlane.f32.xlu1 %v271_v50  ;;  %275 = vadd.xlane.f32.xlu0 %v274_v51 }
 0x193   :  { %v245_v53 = vmul.f32 0.0625, %v236_v52  ;;  %v259_v54 = vmul.f32 %v1281_v48, %v1281_v48  ;;  %v260_v55 = vmul.f32 %v1283_v49, %v1283_v49  ;;  %1086 = vmatprep.subr.bf16.mxu1 %v1085_v2 }
 0x195   :  { %v1291_v56 = vsub.f32 %v211_v19, %v245_v53  ;;  %v277_v57 = vsel %vm212_vm1, %v259_v54, 0.0  ;;  %v280_v58 = vsel %vm212_vm1, %v260_v55, 0.0 }
 0x196   :  { %278 = vadd.xlane.f32.xlu1 %v277_v57  ;;  %281 = vadd.xlane.f32.xlu0 %v280_v58 }
 0x197   :  { %v261_v59 = vmul.f32 %v1291_v56, %v1291_v56 }
 0x199   :  { %v283_v60 = vsel %vm212_vm1, %v261_v59, 0.0 }
 0x19a   :  { %284 = vadd.xlane.f32.xlu1 %v283_v60 }
 0x217   :  { %v264_v3 = vpop.xlane.xlu0 %263 }
 0x218   :  { %v286_v4 = vmul.f32 0.0625, %v264_v3 }
 0x21a   :  { %v294_v5 = vadd.f32 1e-05, %v286_v4 }
 0x21b   :  { %v267_v6 = vpop.xlane.xlu1 %266  ;;  %v270_v7 = vpop.xlane.xlu0 %269 }
 0x21c   :  { %1109 = vrsqrt.f32 %v294_v5  ;;  %v287_v8 = vmul.f32 0.0625, %v267_v6  ;;  %v288_v9 = vmul.f32 0.0625, %v270_v7 }
 0x21e   :  { %v295_v10 = vadd.f32 1e-05, %v287_v8  ;;  %v296_v11 = vadd.f32 1e-05, %v288_v9  ;;  %v485_v9 = vsub.s32 3, %v1241_v15 }
 0x21f   :  { %v273_v12 = vpop.xlane.xlu1 %272  ;;  %v276_v13 = vpop.xlane.xlu0 %275 }
 0x220   :  { %1111 = vrsqrt.f32 %v295_v10  ;;  %v289_v14 = vmul.f32 0.0625, %v273_v12  ;;  %v290_v16 = vmul.f32 0.0625, %v276_v13  ;;  %v486_v10 = vrot.slane %v1247_v17, %v485_v9 }
 0x221   :  { %1113 = vrsqrt.f32 %v296_v11 }
 0x222   :  { %v297_v19 = vadd.f32 1e-05, %v289_v14  ;;  %v298_v20 = vadd.f32 1e-05, %v290_v16 }
 0x223   :  { %v279_v21 = vpop.xlane.xlu1 %278  ;;  %v282_v22 = vpop.xlane.xlu0 %281 }
 0x224   :  { %1115 = vrsqrt.f32 %v297_v19  ;;  %v291_v25 = vmul.f32 0.0625, %v279_v21  ;;  %v292_v26 = vmul.f32 0.0625, %v282_v22 }
 0x225   :  { %1117 = vrsqrt.f32 %v298_v20 }
 0x226   :  { %v1110_v28 = vpop.eup %1109  ;;  %v299_v31 = vadd.f32 1e-05, %v291_v25  ;;  %v300_v32 = vadd.f32 1e-05, %v292_v26 }
 0x227   :  { %v285_v33 = vpop.xlane.xlu1 %284  ;;  %v310_v34 = vmul.f32 %v1110_v28, %v1258_v23 }
 0x228   :  { %1119 = vrsqrt.f32 %v299_v31  ;;  %v293_v36 = vmul.f32 0.0625, %v285_v33 }
 0x229   :  { %1121 = vrsqrt.f32 %v300_v32  ;;  %v322_v37 = vmul.f32 %v321_v27, %v310_v34 }
 0x22a   :  { %v1112_v40 = vpop.eup %1111  ;;  %v301_v41 = vadd.f32 1e-05, %v293_v36 }
 0x22b   :  { %v1114_v42 = vpop.eup %1113  ;;  %v334_v43 = vadd.f32 %v333_v35, %v322_v37  ;;  %v311_v44 = vmul.f32 %v1112_v40, %v1264_v30 }
 0x22c   :  { %1123 = vrsqrt.f32 %v301_v41  ;;  %v312_v45 = vmul.f32 %v1114_v42, %v1262_v29 }
 0x22d   :  { %1029 = vmatprep.mubr.msk.f32.mxu1 %vm212_vm1, %v334_v43  ;;  %v323_v46 = vmul.f32 %v321_v27, %v311_v44 }
 0x22e   :  { %v1116_v47 = vpop.eup %1115  ;;  %v324_v23 = vmul.f32 %v321_v27, %v312_v45 }
 0x22f   :  { %v1118_v50 = vpop.eup %1117  ;;  %v335_v51 = vadd.f32 %v333_v35, %v323_v46  ;;  %v313_v52 = vmul.f32 %v1116_v47, %v1271_v38 }
 0x230   :  { %v336_v53 = vadd.f32 %v333_v35, %v324_v23  ;;  %v314_v54 = vmul.f32 %v1118_v50, %v1273_v39 }
 0x231   :  { %1030 = vmatmul.mubr.msk.f32.vlgmr.msra.gmra.mrb[0].mxu1 %vm212_vm1, %v335_v51  ;;  %v325_v55 = vmul.f32 %v321_v27, %v313_v52 }
 0x232   :  { %v1120_v57 = vpop.eup %1119  ;;  %1032 = vmatprep.mubr.msk.f32.mxu1 %vm212_vm1, %v336_v53  ;;  %v326_v30 = vmul.f32 %v321_v27, %v314_v54  ;;  %1088 = vmatpush3.bf16.msra.mxu1 %v1085_v2 }
 0x233   :  { %v1122_v29 = vpop.eup %1121  ;;  %v337_v58 = vadd.f32 %v333_v35, %v325_v55  ;;  %v315_v59 = vmul.f32 %v1120_v57, %v1281_v48 }
 0x234   :  { %v338_v60 = vadd.f32 %v333_v35, %v326_v30  ;;  %v316_v61 = vmul.f32 %v1122_v29, %v1283_v49 }
 0x235   :  { %1033 = vmatmul.mubr.msk.f32.gmra.mrb[2].mxu1 %vm212_vm1, %v337_v58  ;;  %v327_v38 = vmul.f32 %v321_v27, %v315_v59 }
 0x236   :  { %v1124_v62 = vpop.eup %1123  ;;  %1035 = vmatprep.mubr.msk.f32.mxu1 %vm212_vm1, %v338_v60  ;;  %v328_v39 = vmul.f32 %v321_v27, %v316_v61 }
 0x237   :  { %v339_v63 = vadd.f32 %v333_v35, %v327_v38  ;;  %v317_v0 = vmul.f32 %v1124_v62, %v1291_v56 }
 0x238   :  { %v340_v1 = vadd.f32 %v333_v35, %v328_v39 }
 0x239   :  { %1036 = vmatmul.mubr.msk.f32.gmra.mrb[4].mxu1 %vm212_vm1, %v339_v63  ;;  %v329_v2 = vmul.f32 %v321_v27, %v317_v0 }
 0x23a   :  { %1038 = vmatprep.mubr.msk.f32.mxu1 %vm212_vm1, %v340_v1 }
 0x23b   :  { %v341_v48 = vadd.f32 %v333_v35, %v329_v2 }
 0x23d   :  { %1039 = vmatmul.mubr.msk.f32.gmra.mrb[6].mxu1 %vm212_vm1, %v341_v48 }
 0x304   :  { %v1031_v49 = vpop.f32.mrb[0].mxu1 }
 0x305   :  { %474 = vst.msk [vmem:[%s1483_s6 + $0x8] sm:$0xff] %vm212_vm1, %v1031_v49  ;;  %v434_v3 = vpop.f32.mrb[1].mxu1 }
 0x306   :  { %473 = vst.msk [vmem:[%s1483_s6] sm:$0xff] %vm212_vm1, %v434_v3  ;;  %1045 = vmatprep.mubr.msk.f32.mxu1 %vm212_vm1, %v434_v3 }
 0x307   :  { %1046 = vmatmul.mubr.msk.f32.vlgmr.msra.gmra.mrb[8].mxu1 %vm212_vm1, %v1031_v49 }
 0x308   :  { %v1034_v56 = vpop.f32.mrb[2].mxu1 }
 0x309   :  { %476 = vst.msk [vmem:[%s1483_s6 + $0x18] sm:$0xff] %vm212_vm1, %v1034_v56  ;;  %v444_v4 = vpop.f32.mrb[3].mxu1 }
 0x30a   :  { %475 = vst.msk [vmem:[%s1483_s6 + $0x10] sm:$0xff] %vm212_vm1, %v444_v4  ;;  %1048 = vmatprep.mubr.msk.f32.mxu1 %vm212_vm1, %v444_v4 }
 0x30b   :  { %1049 = vmatmul.mubr.msk.f32.gmra.mrb[10].mxu1 %vm212_vm1, %v1034_v56 }
 0x30c   :  { %v1037_v5 = vpop.f32.mrb[4].mxu1 }
 0x30d   :  { %478 = vst.msk [vmem:[%s1483_s6 + $0x28] sm:$0xff] %vm212_vm1, %v1037_v5  ;;  %v454_v6 = vpop.f32.mrb[5].mxu1 }
 0x30e   :  { %477 = vst.msk [vmem:[%s1483_s6 + $0x20] sm:$0xff] %vm212_vm1, %v454_v6  ;;  %1051 = vmatprep.mubr.msk.f32.mxu1 %vm212_vm1, %v454_v6 }
 0x30f   :  { %1052 = vmatmul.mubr.msk.f32.gmra.mrb[12].mxu1 %vm212_vm1, %v1037_v5 }
 0x310   :  { %v1040_v7 = vpop.f32.mrb[6].mxu1 }
 0x311   :  { %480 = vst.msk [vmem:[%s1483_s6 + $0x38] sm:$0xff] %vm212_vm1, %v1040_v7  ;;  %v464_v8 = vpop.f32.mrb[7].mxu1 }
 0x312   :  { %479 = vst.msk [vmem:[%s1483_s6 + $0x30] sm:$0xff] %vm212_vm1, %v464_v8  ;;  %1054 = vmatprep.mubr.msk.f32.mxu1 %vm212_vm1, %v464_v8 }
 0x313   :  { %1055 = vmatmul.mubr.msk.f32.gmra.mrb[14].mxu1 %vm212_vm1, %v1040_v7 }
 0x3da   :  { %v1047_v11 = vpop.f32.mrb[8].mxu1 }
 0x3db   :  { %v583_v12 = vadd.f32 %v1047_v11, %v486_v10  ;;  %v577_v13 = vpop.f32.mrb[9].mxu1 }
 0x3dc   :  { %v578_v14 = vadd.f32 %v577_v13, %v486_v10 }
 0x3dd   :  { %v625_v16 = vmul.f32 0.70710677, %v583_v12  ;;  %v617_v43 = vmul.f32 0.5, %v583_v12 }
 0x3de   :  { %v624_v18 = vmul.f32 0.70710677, %v578_v14  ;;  %v1050_v19 = vpop.f32.mrb[10].mxu1  ;;  %v616_v46 = vmul.f32 0.5, %v578_v14 }
 0x3df   :  { %1125 = verf.f32 %v625_v16  ;;  %v593_v20 = vadd.f32 %v1050_v19, %v486_v10  ;;  %v587_v21 = vpop.f32.mrb[11].mxu1 }
 0x3e0   :  { %1127 = verf.f32 %v624_v18  ;;  %v588_v22 = vadd.f32 %v587_v21, %v486_v10 }
 0x3e1   :  { %v627_v24 = vmul.f32 0.70710677, %v593_v20  ;;  %v619_v53 = vmul.f32 0.5, %v593_v20 }
 0x3e2   :  { %v626_v25 = vmul.f32 0.70710677, %v588_v22  ;;  %v1053_v26 = vpop.f32.mrb[12].mxu1  ;;  %v618_v57 = vmul.f32 0.5, %v588_v22 }
 0x3e3   :  { %1129 = verf.f32 %v627_v24  ;;  %v603_v27 = vadd.f32 %v1053_v26, %v486_v10  ;;  %v597_v28 = vpop.f32.mrb[13].mxu1 }
 0x3e4   :  { %1131 = verf.f32 %v626_v25  ;;  %v598_v31 = vadd.f32 %v597_v28, %v486_v10 }
 0x3e5   :  { %v629_v32 = vmul.f32 0.70710677, %v603_v27  ;;  %v621_v38 = vmul.f32 0.5, %v603_v27 }
 0x3e6   :  { %v628_v33 = vmul.f32 0.70710677, %v598_v31  ;;  %v1056_v34 = vpop.f32.mrb[14].mxu1  ;;  %v620_v63 = vmul.f32 0.5, %v598_v31 }
 0x3e7   :  { %1133 = verf.f32 %v629_v32  ;;  %v613_v35 = vadd.f32 %v1056_v34, %v486_v10  ;;  %v607_v36 = vpop.f32.mrb[15].mxu1 }
 0x3e8   :  { %1135 = verf.f32 %v628_v33  ;;  %v608_v37 = vadd.f32 %v607_v36, %v486_v10 }
 0x3e9   :  { %v1126_v40 = vpop.eup %1125  ;;  %v631_v41 = vmul.f32 0.70710677, %v613_v35  ;;  %v623_v56 = vmul.f32 0.5, %v613_v35 }
 0x3ea   :  { %v1128_v42 = vpop.eup %1127  ;;  %v630_v44 = vmul.f32 0.70710677, %v608_v37  ;;  %v641_v45 = vadd.f32 1.0, %v1126_v40  ;;  %v622_v6 = vmul.f32 0.5, %v608_v37 }
 0x3eb   :  { %1137 = verf.f32 %v631_v41  ;;  %v640_v47 = vadd.f32 1.0, %v1128_v42 }
 0x3ec   :  { %1139 = verf.f32 %v630_v44  ;;  %v649_v23 = vmul.f32 %v641_v45, %v617_v43 }
 0x3ed   :  { %v1130_v50 = vpop.eup %1129  ;;  %v648_v51 = vmul.f32 %v640_v47, %v616_v46 }
 0x3ee   :  { %v1132_v52 = vpop.eup %1131  ;;  %v659_v54 = vsel %vm212_vm1, %v649_v23, 0.0  ;;  %v643_v55 = vadd.f32 1.0, %v1130_v50 }
 0x3ef   :  { %660 = vadd.xlane.f32.xlu1 %v659_v54  ;;  %v656_v30 = vsel %vm212_vm1, %v648_v51, 0.0  ;;  %v642_v29 = vadd.f32 1.0, %v1132_v52 }
 0x3f0   :  { %657 = vadd.xlane.f32.xlu0 %v656_v30  ;;  %v651_v58 = vmul.f32 %v643_v55, %v619_v53 }
 0x3f1   :  { %v1134_v59 = vpop.eup %1133  ;;  %v650_v60 = vmul.f32 %v642_v29, %v618_v57 }
 0x3f2   :  { %v1136_v61 = vpop.eup %1135  ;;  %v665_v62 = vsel %vm212_vm1, %v651_v58, 0.0  ;;  %v645_v39 = vadd.f32 1.0, %v1134_v59 }
 0x3f3   :  { %666 = vadd.xlane.f32.xlu1 %v665_v62  ;;  %v662_v0 = vsel %vm212_vm1, %v650_v60, 0.0  ;;  %v644_v1 = vadd.f32 1.0, %v1136_v61  ;;  %v785_v61 = vld [vmem:[%s1484_s4 + $0x8] sm:$0xff] }
 0x3f4   :  { %663 = vadd.xlane.f32.xlu0 %v662_v0  ;;  %v653_v2 = vmul.f32 %v645_v39, %v621_v38 }
 0x3f5   :  { %v1138_v48 = vpop.eup %1137  ;;  %v652_v49 = vmul.f32 %v644_v1, %v620_v63 }
 0x3f6   :  { %v1140_v3 = vpop.eup %1139  ;;  %v671_v4 = vsel %vm212_vm1, %v653_v2, 0.0  ;;  %v647_v5 = vadd.f32 1.0, %v1138_v48 }
 0x3f7   :  { %672 = vadd.xlane.f32.xlu1 %v671_v4  ;;  %v668_v7 = vsel %vm212_vm1, %v652_v49, 0.0  ;;  %v646_v8 = vadd.f32 1.0, %v1140_v3 }
 0x3f8   :  { %669 = vadd.xlane.f32.xlu0 %v668_v7  ;;  %v655_v9 = vmul.f32 %v647_v5, %v623_v56 }
 0x3f9   :  { %v654_v10 = vmul.f32 %v646_v8, %v622_v6 }
 0x3fa   :  { %v677_v11 = vsel %vm212_vm1, %v655_v9, 0.0 }
 0x3fb   :  { %678 = vadd.xlane.f32.xlu1 %v677_v11  ;;  %v674_v12 = vsel %vm212_vm1, %v654_v10, 0.0 }
 0x3fc   :  { %675 = vadd.xlane.f32.xlu0 %v674_v12 }
 0x47c   :  { %v661_v13 = vpop.xlane.xlu1 %660 }
 0x47d   :  { %v681_v14 = vmul.f32 0.0625, %v661_v13  ;;  %v658_v16 = vpop.xlane.xlu0 %657 }
 0x47e   :  { %v680_v18 = vmul.f32 0.0625, %v658_v16 }
 0x47f   :  { %v1380_v19 = vsub.f32 %v649_v23, %v681_v14  ;;  %v774_v14 = vsub.s32 5, %v1241_v15 }
 0x480   :  { %v1382_v20 = vsub.f32 %v648_v51, %v680_v18  ;;  %v667_v21 = vpop.xlane.xlu1 %666 }
 0x481   :  { %v683_v22 = vmul.f32 0.0625, %v667_v21  ;;  %v664_v24 = vpop.xlane.xlu0 %663  ;;  %v697_v25 = vmul.f32 %v1380_v19, %v1380_v19 }
 0x482   :  { %v682_v26 = vmul.f32 0.0625, %v664_v24  ;;  %v696_v27 = vmul.f32 %v1382_v20, %v1382_v20 }
 0x483   :  { %v1388_v28 = vsub.f32 %v651_v58, %v683_v22  ;;  %v707_v31 = vsel %vm212_vm1, %v697_v25, 0.0 }
 0x484   :  { %v1391_v32 = vsub.f32 %v650_v60, %v682_v26  ;;  %v673_v33 = vpop.xlane.xlu1 %672  ;;  %708 = vadd.xlane.f32.xlu1 %v707_v31  ;;  %v704_v34 = vsel %vm212_vm1, %v696_v27, 0.0  ;;  %v784_v60 = vld [vmem:[%s1484_s4] sm:$0xff] }
 0x485   :  { %v685_v35 = vmul.f32 0.0625, %v673_v33  ;;  %705 = vadd.xlane.f32.xlu0 %v704_v34  ;;  %v670_v36 = vpop.xlane.xlu0 %669  ;;  %v699_v37 = vmul.f32 %v1388_v28, %v1388_v28  ;;  %v1089_v38 = vpack.c.bf16 %v785_v61, %v784_v60  ;;  %v775_v33 = vrot.slane %v1247_v17, %v774_v14 }
 0x486   :  { %v684_v40 = vmul.f32 0.0625, %v670_v36  ;;  %v698_v41 = vmul.f32 %v1391_v32, %v1391_v32 }
 0x487   :  { %v1398_v42 = vsub.f32 %v653_v2, %v685_v35  ;;  %v713_v43 = vsel %vm212_vm1, %v699_v37, 0.0  ;;  %1090 = vmatprep.subr.bf16.mxu0 %v1089_v38 }
 0x488   :  { %v1401_v44 = vsub.f32 %v652_v49, %v684_v40  ;;  %714 = vadd.xlane.f32.xlu1 %v713_v43  ;;  %v679_v45 = vpop.xlane.xlu1 %678  ;;  %v710_v46 = vsel %vm212_vm1, %v698_v41, 0.0  ;;  %1092 = vmatpush3.bf16.msra.mxu0 %v1089_v38 }
 0x489   :  { %v687_v47 = vmul.f32 0.0625, %v679_v45  ;;  %711 = vadd.xlane.f32.xlu0 %v710_v46  ;;  %v676_v23 = vpop.xlane.xlu0 %675  ;;  %v701_v50 = vmul.f32 %v1398_v42, %v1398_v42 }
 0x48a   :  { %v686_v51 = vmul.f32 0.0625, %v676_v23  ;;  %v700_v52 = vmul.f32 %v1401_v44, %v1401_v44 }
 0x48b   :  { %v1408_v53 = vsub.f32 %v655_v9, %v687_v47  ;;  %v719_v54 = vsel %vm212_vm1, %v701_v50, 0.0  ;;  %v762_v9 = vsub.s32 4, %v1241_v15 }
 0x48c   :  { %v1411_v55 = vsub.f32 %v654_v10, %v686_v51  ;;  %720 = vadd.xlane.f32.xlu1 %v719_v54  ;;  %v716_v57 = vsel %vm212_vm1, %v700_v52, 0.0 }
 0x48d   :  { %717 = vadd.xlane.f32.xlu0 %v716_v57  ;;  %v703_v30 = vmul.f32 %v1408_v53, %v1408_v53  ;;  %v763_v21 = vrot.slane %v1247_v17, %v762_v9 }
 0x48e   :  { %v702_v29 = vmul.f32 %v1411_v55, %v1411_v55 }
 0x48f   :  { %v725_v58 = vsel %vm212_vm1, %v703_v30, 0.0 }
 0x490   :  { %726 = vadd.xlane.f32.xlu1 %v725_v58  ;;  %v722_v59 = vsel %vm212_vm1, %v702_v29, 0.0 }
 0x491   :  { %723 = vadd.xlane.f32.xlu0 %v722_v59 }
 0x511   :  { %v709_v62 = vpop.xlane.xlu1 %708 }
 0x512   :  { %v729_v39 = vmul.f32 0.0625, %v709_v62  ;;  %v706_v63 = vpop.xlane.xlu0 %705 }
 0x513   :  { %v728_v0 = vmul.f32 0.0625, %v706_v63 }
 0x514   :  { %v737_v1 = vadd.f32 1e-05, %v729_v39 }
 0x515   :  { %v736_v2 = vadd.f32 1e-05, %v728_v0  ;;  %v715_v48 = vpop.xlane.xlu1 %714 }
 0x516   :  { %1141 = vrsqrt.f32 %v737_v1  ;;  %v731_v49 = vmul.f32 0.0625, %v715_v48  ;;  %v712_v3 = vpop.xlane.xlu0 %711 }
 0x517   :  { %1143 = vrsqrt.f32 %v736_v2  ;;  %v730_v56 = vmul.f32 0.0625, %v712_v3 }
 0x518   :  { %v739_v4 = vadd.f32 1e-05, %v731_v49 }
 0x519   :  { %v738_v5 = vadd.f32 1e-05, %v730_v56  ;;  %v721_v6 = vpop.xlane.xlu1 %720 }
 0x51a   :  { %1145 = vrsqrt.f32 %v739_v4  ;;  %v733_v7 = vmul.f32 0.0625, %v721_v6  ;;  %v718_v8 = vpop.xlane.xlu0 %717 }
 0x51b   :  { %1147 = vrsqrt.f32 %v738_v5  ;;  %v732_v10 = vmul.f32 0.0625, %v718_v8 }
 0x51c   :  { %v741_v11 = vadd.f32 1e-05, %v733_v7 }
 0x51d   :  { %v740_v12 = vadd.f32 1e-05, %v732_v10  ;;  %v727_v13 = vpop.xlane.xlu1 %726 }
 0x51e   :  { %1149 = vrsqrt.f32 %v741_v11  ;;  %v735_v16 = vmul.f32 0.0625, %v727_v13  ;;  %v724_v18 = vpop.xlane.xlu0 %723 }
 0x51f   :  { %1151 = vrsqrt.f32 %v740_v12  ;;  %v734_v22 = vmul.f32 0.0625, %v724_v18 }
 0x520   :  { %v1142_v24 = vpop.eup %1141  ;;  %v743_v25 = vadd.f32 1e-05, %v735_v16 }
 0x521   :  { %v1144_v26 = vpop.eup %1143  ;;  %v753_v27 = vmul.f32 %v1142_v24, %v1380_v19  ;;  %v742_v31 = vadd.f32 1e-05, %v734_v22 }
 0x522   :  { %1153 = vrsqrt.f32 %v743_v25  ;;  %v752_v34 = vmul.f32 %v1144_v26, %v1382_v20 }
 0x523   :  { %v765_v35 = vmul.f32 %v763_v21, %v753_v27  ;;  %1155 = vrsqrt.f32 %v742_v31 }
 0x524   :  { %v1146_v15 = vpop.eup %1145  ;;  %v764_v36 = vmul.f32 %v763_v21, %v752_v34 }
 0x525   :  { %v1148_v37 = vpop.eup %1147  ;;  %v755_v40 = vmul.f32 %v1146_v15, %v1388_v28  ;;  %v777_v45 = vadd.f32 %v775_v33, %v765_v35 }
 0x526   :  { %v776_v41 = vadd.f32 %v775_v33, %v764_v36  ;;  %v754_v43 = vmul.f32 %v1148_v37, %v1391_v32 }
 0x527   :  { %v767_v46 = vmul.f32 %v763_v21, %v755_v40 }
 0x528   :  { %v1150_v47 = vpop.eup %1149  ;;  %1061 = vmatprep.mubr.msk.f32.mxu0 %vm212_vm1, %v776_v41  ;;  %v766_v19 = vmul.f32 %v763_v21, %v754_v43 }
 0x529   :  { %v1152_v17 = vpop.eup %1151  ;;  %1062 = vmatmul.mubr.msk.f32.vlgmr.msra.gmra.mrb[8].mxu0 %vm212_vm1, %v777_v45  ;;  %v757_v20 = vmul.f32 %v1150_v47, %v1398_v42  ;;  %v779_v51 = vadd.f32 %v775_v33, %v767_v46 }
 0x52a   :  { %v778_v23 = vadd.f32 %v775_v33, %v766_v19  ;;  %v756_v50 = vmul.f32 %v1152_v17, %v1401_v44 }
 0x52b   :  { %v769_v52 = vmul.f32 %v763_v21, %v757_v20 }
 0x52c   :  { %v1154_v28 = vpop.eup %1153  ;;  %1064 = vmatprep.mubr.msk.f32.mxu0 %vm212_vm1, %v778_v23  ;;  %v768_v32 = vmul.f32 %v763_v21, %v756_v50 }
 0x52d   :  { %v1156_v54 = vpop.eup %1155  ;;  %1065 = vmatmul.mubr.msk.f32.gmra.mrb[10].mxu0 %vm212_vm1, %v779_v51  ;;  %v759_v57 = vmul.f32 %v1154_v28, %v1408_v53  ;;  %v781_v58 = vadd.f32 %v775_v33, %v769_v52 }
 0x52e   :  { %v780_v30 = vadd.f32 %v775_v33, %v768_v32  ;;  %v758_v29 = vmul.f32 %v1156_v54, %v1411_v55 }
 0x52f   :  { %v771_v59 = vmul.f32 %v763_v21, %v759_v57 }
 0x530   :  { %1067 = vmatprep.mubr.msk.f32.mxu0 %vm212_vm1, %v780_v30  ;;  %v770_v42 = vmul.f32 %v763_v21, %v758_v29 }
 0x531   :  { %1068 = vmatmul.mubr.msk.f32.gmra.mrb[12].mxu0 %vm212_vm1, %v781_v58  ;;  %v783_v60 = vadd.f32 %v775_v33, %v771_v59 }
 0x532   :  { %v782_v44 = vadd.f32 %v775_v33, %v770_v42 }
 0x534   :  { %1070 = vmatprep.mubr.msk.f32.mxu0 %vm212_vm1, %v782_v44 }
 0x535   :  { %1071 = vmatmul.mubr.msk.f32.gmra.mrb[14].mxu0 %vm212_vm1, %v783_v60 }
 0x5fc   :  { %v1063_v61 = vpop.f32.mrb[8].mxu0 }
 0x5fd   :  { %916 = vst.msk [vmem:[%s1485_s7 + $0x8] sm:$0xff] %vm42_vm0, %v1063_v61  ;;  %v876_v53 = vpop.f32.mrb[9].mxu0 }
 0x5fe   :  { %915 = vst.msk [vmem:[%s1485_s7] sm:$0xff] %vm42_vm0, %v876_v53 }
 0x600   :  { %v1066_v55 = vpop.f32.mrb[10].mxu0 }
 0x601   :  { %918 = vst.msk [vmem:[%s1485_s7 + $0x18] sm:$0xff] %vm42_vm0, %v1066_v55  ;;  %v886_v38 = vpop.f32.mrb[11].mxu0 }
 0x602   :  { %917 = vst.msk [vmem:[%s1485_s7 + $0x10] sm:$0xff] %vm42_vm0, %v886_v38 }
 0x604   :  { %v1069_v62 = vpop.f32.mrb[12].mxu0 }
 0x605   :  { %920 = vst.msk [vmem:[%s1485_s7 + $0x28] sm:$0xff] %vm42_vm0, %v1069_v62  ;;  %v896_v39 = vpop.f32.mrb[13].mxu0 }
 0x606   :  { %919 = vst.msk [vmem:[%s1485_s7 + $0x20] sm:$0xff] %vm42_vm0, %v896_v39 }
 0x608   :  { %v1072_v63 = vpop.f32.mrb[14].mxu0 }
 0x609   :  { %922 = vst.msk [vmem:[%s1485_s7 + $0x38] sm:$0xff] %vm42_vm0, %v1072_v63  ;;  %v906_v0 = vpop.f32.mrb[15].mxu0 }
 0x60a   :  { %921 = vst.msk [vmem:[%s1485_s7 + $0x30] sm:$0xff] %vm42_vm0, %v906_v0 }

</bundles_post_ra>
